<compile_context>
chip_gen: v5e
topology: v5e:2x2
jax: 0.10.0
libtpu: 0.0.40
codegen_flags: <defaults>
</compile_context>

<pallas_src>
from functools import partial

import jax
import jax.numpy as jnp
from jax.experimental import pallas as pl
from jax.experimental.pallas import tpu as pltpu


def _round_up(n, m):
    return ((n + m - 1) // m) * m


def _make_birnn_kernel(T, T_tile, nt, B_half, H_pad, I, mdt):
    """Kernel factory closing over static sizes.

    Refs:
      x_ref    : [T_tile, B_half, I]        streamed time tile (dtype mdt)
      wif_ref  : [I, 4*H_pad]   whf_ref: [H_pad, 4*H_pad]   bf_ref: [1, 4*H_pad]
      wib_ref  : [I, 4*H_pad]   bb_ref : [1, 4*H_pad]       (backward, 1 step)
      wfcf_ref : [H_pad, O_pad] wfcb_ref: [H_pad, O_pad]    bfc_ref: [1, O_pad]
      out_ref  : [B_half, O_pad]
      h_sc/c_sc: [B_half, H_pad] f32 VMEM scratch carrying state across tiles.
    """
    f32 = jnp.float32
    # Offset of the true last time step (T-1) inside the LAST tile.
    last_off = (T - 1) - (nt - 1) * T_tile
    assert 0 <= last_off < T_tile

    def sig(z):  # sigmoid(x) == 0.5*(tanh(x/2)+1): one EUP op instead of exp+div
        return 0.5 * jnp.tanh(0.5 * z) + 0.5

    def kernel(x_ref, wif_ref, whf_ref, bf_ref,
               wib_ref, bb_ref,
               wfcf_ref, wfcb_ref, bfc_ref,
               out_ref, h_sc, c_sc):
        t_idx = pl.program_id(1)            # serial ("arbitrary") time-tile axis

        @pl.when(t_idx == 0)
        def _():
            h_sc[...] = jnp.zeros_like(h_sc)
            c_sc[...] = jnp.zeros_like(c_sc)

        # --- Phase 1: batched input projection for the whole tile -----------
        # One well-shaped MXU matmul (T_tile*B_half rows) instead of T tiny
        # per-step ones; the bias is folded in here.  B_half is a whole
        # sublane tile (8 rows for f32, 16 for bf16), so both reshapes are
        # layout no-ops and pre[t] below is a copy-free leading-axis index.
        x_tile = x_ref[...]                                    # [T_tile,B_half,I]
        x2 = x_tile.reshape(T_tile * B_half, I)
        pre = (jnp.dot(x2, wif_ref[...], preferred_element_type=f32)
               .reshape(T_tile, B_half, 4 * H_pad)
               + bf_ref[...])                                  # [T_tile,B_half,4H]

        # --- Phase 2: serial recurrence (fully unrolled, state in vregs) ----
        whh = whf_ref[...]                                     # read once per tile
        h = h_sc[...]
        c = c_sc[...]
        keep_tail = t_idx < nt - 1          # tail steps are padding on last tile
        for t in range(T_tile):
            g = (jnp.dot(h.astype(mdt), whh, preferred_element_type=f32)
                 + pre[t])                                     # [B_half, 4H_pad]
            i_g = sig(g[:, 0:H_pad])                           # lane-group aligned
            f_g = sig(g[:, H_pad:2 * H_pad])
            g_g = jnp.tanh(g[:, 2 * H_pad:3 * H_pad])
            o_g = sig(g[:, 3 * H_pad:4 * H_pad])
            c_new = f_g * c + i_g * g_g
            h_new = o_g * jnp.tanh(c_new)
            if t <= last_off:
                # This step is a real time step on every tile.
                h, c = h_new, c_new
            else:
                # Static tail: zero-padding only on the last tile -> cheap
                # scalar-predicated select keeps h/c unchanged there.
                h = jnp.where(keep_tail, h_new, h)
                c = jnp.where(keep_tail, c_new, c)
        h_sc[...] = h
        c_sc[...] = c

        # --- Last tile: one backward step on x[:, T-1] + final Linear -------
        @pl.when(t_idx == nt - 1)
        def _():
            x_last = x_tile[last_off]                          # [B_half, I]
            gb = (jnp.dot(x_last, wib_ref[...], preferred_element_type=f32)
                  + bb_ref[...])
            i_b = sig(gb[:, 0:H_pad])
            g_b = jnp.tanh(gb[:, 2 * H_pad:3 * H_pad])
            o_b = sig(gb[:, 3 * H_pad:4 * H_pad])
            c_b = i_b * g_b                                    # f_b * c0 == 0
            h_b = o_b * jnp.tanh(c_b)
            # Linear(2H -> O) as two H-sized matmuls (avoids a concat).
            out_ref[...] = (jnp.dot(h.astype(mdt), wfcf_ref[...],
                                    preferred_element_type=f32)
                            + jnp.dot(h_b.astype(mdt), wfcb_ref[...],
                                      preferred_element_type=f32)
                            + bfc_ref[...])

    return kernel


@partial(jax.jit, static_argnames=("matmul_dtype", "batch_core_split"))
def birnn_forward(x, params, matmul_dtype=jnp.bfloat16, batch_core_split=False):
    """x: [B, T, I] float32 (batch_first, like PyTorch). Returns [B, O].

    matmul_dtype    : dtype of the MXU operands (bf16 default; f32 for a
                      bit-faithful check).  Accumulation is always f32.
    batch_core_split: split the batch over a leading "parallel" grid axis.
                      Enable on v7x (2 TensorCores) when B >= 16; it only
                      serializes work on single-TC v5e/v6e.
    """
    B, T, I = x.shape
    H = params["w_hh_f"].shape[1]
    O = params["w_fc"].shape[0]
    f32 = jnp.float32
    mdt = matmul_dtype
    itemsize = jnp.dtype(mdt).itemsize

    # ---- static tiling -----------------------------------------------------
    H_pad = _round_up(H, 128)                 # lane-aligned gate slices
    O_pad = _round_up(O, 128)                 # lane-dense output store
    # Sublane tile of the matmul dtype (bf16 packs 16 rows per vreg tile); a
    # B pad to this multiple makes the in-kernel reshape layout-free.
    sub = 16 if jnp.dtype(mdt) == jnp.dtype(jnp.bfloat16) else 8
    if batch_core_split:
        n_bsplit = 2
        B_pad = _round_up(B, 2 * sub)
    else:
        n_bsplit = 1
        B_pad = _round_up(B, sub)
    B_half = B_pad // n_bsplit

    T_TILE_CAP = 64                           # fully unrolled -> LLO visibility;
    T_tile = T if T <= T_TILE_CAP else T_TILE_CAP   # bigger tiles would switch to
    nt = -(-T // T_tile)                      # lax.fori_loop(unroll=8).
    T_pad = nt * T_tile
    assert T_pad - T < T_tile

    # ---- host-side input prep (single fused pad/transpose/cast pass) -------
    x_tbi = jnp.transpose(x, (1, 0, 2)).astype(mdt)            # [T, B, I]
    x_tbi = jnp.pad(x_tbi, ((0, T_pad - T), (0, B_pad - B), (0, 0)))

    # ---- weight repack: gate blocks occupy whole 128-lane groups -----------
    # (In a real deployment this runs once at init, not per call.)
    def pad_ih(w):                     # [4H, I] -> [I, 4*H_pad]
        wt = w.T.reshape(I, 4, H).astype(f32)
        out = jnp.zeros((I, 4, H_pad), f32).at[:, :, :H].set(wt)
        return out.reshape(I, 4 * H_pad).astype(mdt)

    def pad_hh(w):                     # [4H, H] -> [H_pad, 4*H_pad]
        wt = w.T.reshape(H, 4, H).astype(f32)
        out = jnp.zeros((H_pad, 4, H_pad), f32).at[:H, :, :H].set(wt)
        return out.reshape(H_pad, 4 * H_pad).astype(mdt)

    def pad_bias(b_ih, b_hh):          # -> [1, 4*H_pad] (kept f32)
        b = (b_ih + b_hh).reshape(4, H).astype(f32)
        return jnp.zeros((4, H_pad), f32).at[:, :H].set(b).reshape(1, 4 * H_pad)

    wif = pad_ih(params["w_ih_f"])
    whf = pad_hh(params["w_hh_f"])
    bf = pad_bias(params["b_ih_f"], params["b_hh_f"])
    wib = pad_ih(params["w_ih_b"])
    bb = pad_bias(params["b_ih_b"], params["b_hh_b"])
    # NOTE: w_hh_b is intentionally unused: the backward direction contributes
    # only its first step (zero initial state) to out[:, -1, H:].

    wfc = params["w_fc"].astype(f32)                           # [O, 2H]
    wfc_f = jnp.zeros((H_pad, O_pad), f32).at[:H, :O].set(wfc[:, :H].T).astype(mdt)
    wfc_b = jnp.zeros((H_pad, O_pad), f32).at[:H, :O].set(wfc[:, H:].T).astype(mdt)
    bfc = jnp.zeros((1, O_pad), f32).at[0, :O].set(params["b_fc"].astype(f32))

    kernel = _make_birnn_kernel(T, T_tile, nt, B_half, H_pad, I, mdt)

    # Constant weights: whole array resident in VMEM, single-buffered (no
    # per-grid-step DMA, no double buffer).
    resident = pl.BlockSpec(memory_space=pltpu.MemorySpace.VMEM)
    in_specs = [
        pl.BlockSpec((T_tile, B_half, I), lambda b, t: (t, b, 0)),  # streamed x
        resident, resident, resident,                               # wif, whf, bf
        resident, resident,                                         # wib, bb
        resident, resident, resident,                               # wfc_f, wfc_b, bfc
    ]
    out_spec = pl.BlockSpec((B_half, O_pad), lambda b, t: (b, 0))

    # ---- cost estimate (lets XLA overlap surrounding work) -----------------
    flops = int(2 * T_pad * B_pad * I * 4 * H_pad            # input projection
                + 2 * T_pad * B_pad * H_pad * 4 * H_pad      # recurrence
                + 2 * B_pad * I * 4 * H_pad                  # backward step
                + 2 * 2 * B_pad * H_pad * O_pad)             # final Linear
    transcendentals = int(5 * (T_pad + 1) * B_pad * H_pad)
    bytes_accessed = int(x_tbi.size * itemsize
                         + (wif.size + whf.size + wib.size
                            + wfc_f.size + wfc_b.size) * itemsize
                         + (bf.size + bb.size + bfc.size) * 4
                         + B_pad * O_pad * 4)

    # ---- VMEM budget (real buffer depths) -----------------------------------
    weight_vmem = ((wif.size + whf.size + wib.size + wfc_f.size + wfc_b.size)
                   * itemsize + (bf.size + bb.size + bfc.size) * 4)
    xtile_vmem = 2 * T_tile * B_half * max(I, 128) * itemsize   # double-buffered
    pre_vmem = T_tile * B_half * 4 * H_pad * 4                  # phase-1 intermediate
    state_vmem = (2 * B_half * H_pad + 2 * B_half * O_pad) * 4
    vmem_needed = weight_vmem + xtile_vmem + pre_vmem + state_vmem
    try:  # per-generation cap: ~96 MiB on 128 MiB parts, ~48 MiB on v7x (64 MiB)
        phys_vmem = int(pltpu.get_tpu_info().vmem_capacity_bytes)
    except Exception:
        phys_vmem = 64 * 2 ** 20
    vmem_limit = int(min(int(0.75 * phys_vmem),
                         max(48 * 2 ** 20, 2 * vmem_needed)))

    out = pl.pallas_call(
        kernel,
        out_shape=jax.ShapeDtypeStruct((B_pad, O_pad), f32),
        grid_spec=pltpu.PrefetchScalarGridSpec(
            num_scalar_prefetch=0,
            grid=(n_bsplit, nt),                 # (batch shards, time tiles)
            in_specs=in_specs,
            out_specs=out_spec,
            scratch_shapes=[pltpu.VMEM((B_half, H_pad), f32),   # h carry
                            pltpu.VMEM((B_half, H_pad), f32)],  # c carry
        ),
        compiler_params=pltpu.CompilerParams(
            dimension_semantics=("parallel", "arbitrary"),
            vmem_limit_bytes=vmem_limit),
        cost_estimate=pl.CostEstimate(flops=flops,
                                      transcendentals=transcendentals,
                                      bytes_accessed=bytes_accessed),
    )(x_tbi, wif, whf, bf, wib, bb, wfc_f, wfc_b, bfc)

    return out[:B, :O]


# ---------------- pure-JAX reference (mirrors PyTorch nn.LSTM + Linear) -----
def _lstm_cell_ref(x_t, h, c, w_ih, w_hh, b_ih, b_hh, H):
    g = x_t @ w_ih.T + h @ w_hh.T + b_ih + b_hh
    i = jax.nn.sigmoid(g[:, :H])
    f = jax.nn.sigmoid(g[:, H:2 * H])
    gg = jnp.tanh(g[:, 2 * H:3 * H])
    o = jax.nn.sigmoid(g[:, 3 * H:])
    c = f * c + i * gg
    h = o * jnp.tanh(c)
    return h, c


def birnn_reference(x, p):
    B, T, I = x.shape
    H = p["w_hh_f"].shape[1]
    h = jnp.zeros((B, H), jnp.float32)
    c = jnp.zeros((B, H), jnp.float32)
    for t in range(T):
        h, c = _lstm_cell_ref(x[:, t], h, c, p["w_ih_f"], p["w_hh_f"],
                              p["b_ih_f"], p["b_hh_f"], H)
    hb = jnp.zeros((B, H), jnp.float32)
    cb = jnp.zeros((B, H), jnp.float32)
    hb, cb = _lstm_cell_ref(x[:, T - 1], hb, cb, p["w_ih_b"], p["w_hh_b"],
                            p["b_ih_b"], p["b_hh_b"], H)
    out = jnp.concatenate([h, hb], axis=1)
    return out @ p["w_fc"].T + p["b_fc"]


def init_params(key, input_size, hidden_size, output_size):
    H, I, O = hidden_size, input_size, output_size
    ks = jax.random.split(key, 10)
    k_lstm = 1.0 / jnp.sqrt(H)
    k_fc = 1.0 / jnp.sqrt(2 * H)
    u = lambda k, shape, s: jax.random.uniform(k, shape, jnp.float32, -s, s)
    return {
        "w_ih_f": u(ks[0], (4 * H, I), k_lstm),
        "w_hh_f": u(ks[1], (4 * H, H), k_lstm),
        "b_ih_f": u(ks[2], (4 * H,), k_lstm),
        "b_hh_f": u(ks[3], (4 * H,), k_lstm),
        "w_ih_b": u(ks[4], (4 * H, I), k_lstm),
        "w_hh_b": u(ks[5], (4 * H, H), k_lstm),
        "b_ih_b": u(ks[6], (4 * H,), k_lstm),
        "b_hh_b": u(ks[7], (4 * H,), k_lstm),
        "w_fc": u(ks[8], (O, 2 * H), k_fc),
        "b_fc": u(ks[9], (O,), k_fc),
    }


if __name__ == "__main__":
    B, T, I, H, O = 2, 8, 8, 32, 4
    key = jax.random.PRNGKey(0)
    kx, kp = jax.random.split(key)
    x = jax.random.normal(kx, (B, T, I), jnp.float32)
    params = init_params(kp, I, H, O)

    y_ref = birnn_reference(x, params)

    # fp32 MXU path: bit-faithful vs. the reference.
    y32 = jax.block_until_ready(birnn_forward(x, params,
                                              matmul_dtype=jnp.float32))
    assert y32.shape == (B, O)
    assert jnp.allclose(y32, y_ref, atol=1e-5, rtol=1e-5), (y32, y_ref)

    # bf16 MXU operands (performance default): relaxed tolerance.
    ybf = jax.block_until_ready(birnn_forward(x, params,
                                              matmul_dtype=jnp.bfloat16))
    assert ybf.shape == (B, O)
    assert jnp.allclose(ybf, y_ref, atol=5e-2, rtol=5e-2), (ybf, y_ref)

    print("KERNEL_OK")
</pallas_src>

<mosaic_0001>
module attributes {stable_mosaic.version = 11 : i64} {
  func.func @kernel(%arg0: i32, %arg1: i32, %arg2: memref<8x8x8xf32, #tpu.memory_space<vmem>>, %arg3: memref<8x512xf32, #tpu.memory_space<vmem>>, %arg4: memref<128x512xf32, #tpu.memory_space<vmem>>, %arg5: memref<1x512xf32, #tpu.memory_space<vmem>>, %arg6: memref<8x512xf32, #tpu.memory_space<vmem>>, %arg7: memref<1x512xf32, #tpu.memory_space<vmem>>, %arg8: memref<128x128xf32, #tpu.memory_space<vmem>>, %arg9: memref<128x128xf32, #tpu.memory_space<vmem>>, %arg10: memref<1x128xf32, #tpu.memory_space<vmem>>, %arg11: memref<8x128xf32, #tpu.memory_space<vmem>>, %arg12: memref<8x128xf32, #tpu.memory_space<vmem>>, %arg13: memref<8x128xf32, #tpu.memory_space<vmem>>) attributes {dimension_semantics = [#tpu.dimension_semantics<parallel>, #tpu.dimension_semantics<arbitrary>], iteration_bounds = array<i64: 1, 1>, scalar_prefetch = 0 : i64, scratch_operands = 2 : i64, tpu.core_type = #tpu.core_type<tc>, window_params = [{transform_indices = @transform_0, window_bounds = array<i64: 8, 8, 8>}, {pipeline_mode = #tpu.pipeline_mode<synchronous>, transform_indices = @transform_1, window_bounds = array<i64: 8, 512>}, {pipeline_mode = #tpu.pipeline_mode<synchronous>, transform_indices = @transform_2, window_bounds = array<i64: 128, 512>}, {pipeline_mode = #tpu.pipeline_mode<synchronous>, transform_indices = @transform_3, window_bounds = array<i64: 1, 512>}, {pipeline_mode = #tpu.pipeline_mode<synchronous>, transform_indices = @transform_4, window_bounds = array<i64: 8, 512>}, {pipeline_mode = #tpu.pipeline_mode<synchronous>, transform_indices = @transform_5, window_bounds = array<i64: 1, 512>}, {pipeline_mode = #tpu.pipeline_mode<synchronous>, transform_indices = @transform_6, window_bounds = array<i64: 128, 128>}, {pipeline_mode = #tpu.pipeline_mode<synchronous>, transform_indices = @transform_7, window_bounds = array<i64: 128, 128>}, {pipeline_mode = #tpu.pipeline_mode<synchronous>, transform_indices = @transform_8, window_bounds = array<i64: 1, 128>}, {transform_indices = @transform_9, window_bounds = array<i64: 8, 128>}]} {
    %c0_i32 = arith.constant 0 : i32
    %0 = arith.cmpi eq, %arg1, %c0_i32 : i32
    %1 = arith.extui %0 : i1 to i32
    %c0_i32_0 = arith.constant 0 : i32
    %2 = arith.cmpi ne, %1, %c0_i32_0 : i32
    scf.if %2 {
      %cst_99 = arith.constant 0.000000e+00 : f32
      %300 = vector.broadcast %cst_99 : f32 to vector<8x128xf32>
      %c0_100 = arith.constant 0 : index
      %c0_101 = arith.constant 0 : index
      %301 = vector.load %arg12[%c0_100, %c0_101] : memref<8x128xf32, #tpu.memory_space<vmem>>, vector<8x128xf32>
      tpu.vector_store %arg12[%c0_100, %c0_101], %300 {strides = array<i32>} : memref<8x128xf32, #tpu.memory_space<vmem>>, vector<8x128xf32>,
      %cst_102 = arith.constant 0.000000e+00 : f32
      %302 = vector.broadcast %cst_102 : f32 to vector<8x128xf32>
      %c0_103 = arith.constant 0 : index
      %c0_104 = arith.constant 0 : index
      %303 = vector.load %arg13[%c0_103, %c0_104] : memref<8x128xf32, #tpu.memory_space<vmem>>, vector<8x128xf32>
      tpu.vector_store %arg13[%c0_103, %c0_104], %302 {strides = array<i32>} : memref<8x128xf32, #tpu.memory_space<vmem>>, vector<8x128xf32>,
    } else {
    }
    %c0 = arith.constant 0 : index
    %c0_1 = arith.constant 0 : index
    %c0_2 = arith.constant 0 : index
    %3 = vector.load %arg2[%c0, %c0_1, %c0_2] : memref<8x8x8xf32, #tpu.memory_space<vmem>>, vector<8x8x8xf32>
    %4 = vector.shape_cast %3 : vector<8x8x8xf32> to vector<64x8xf32>
    %c0_3 = arith.constant 0 : index
    %c0_4 = arith.constant 0 : index
    %5 = vector.load %arg3[%c0_3, %c0_4] : memref<8x512xf32, #tpu.memory_space<vmem>>, vector<8x512xf32>
    %cst = arith.constant dense<0.000000e+00> : vector<64x512xf32>
    %6 = tpu.matmul %4, %5, %cst {dimension_numbers = #tpu.dot_dimension_numbers<[1], [0], [0], [1], [0, 0, 1, 1], [], []>} : vector<64x8xf32>, vector<8x512xf32>, vector<64x512xf32> -> vector<64x512xf32>
    %7 = vector.shape_cast %6 : vector<64x512xf32> to vector<8x8x512xf32>
    %c0_5 = arith.constant 0 : index
    %c0_6 = arith.constant 0 : index
    %8 = vector.load %arg5[%c0_5, %c0_6] : memref<1x512xf32, #tpu.memory_space<vmem>>, vector<1x512xf32>
    %9 = vector.shape_cast %8 : vector<1x512xf32> to vector<1x1x512xf32>
    %10 = vector.broadcast %9 : vector<1x1x512xf32> to vector<8x8x512xf32>
    %11 = arith.addf %7, %10 : vector<8x8x512xf32>
    %c0_7 = arith.constant 0 : index
    %c0_8 = arith.constant 0 : index
    %12 = vector.load %arg4[%c0_7, %c0_8] : memref<128x512xf32, #tpu.memory_space<vmem>>, vector<128x512xf32>
    %c0_9 = arith.constant 0 : index
    %c0_10 = arith.constant 0 : index
    %13 = vector.load %arg12[%c0_9, %c0_10] : memref<8x128xf32, #tpu.memory_space<vmem>>, vector<8x128xf32>
    %c0_11 = arith.constant 0 : index
    %c0_12 = arith.constant 0 : index
    %14 = vector.load %arg13[%c0_11, %c0_12] : memref<8x128xf32, #tpu.memory_space<vmem>>, vector<8x128xf32>
    %cst_13 = arith.constant dense<0.000000e+00> : vector<8x512xf32>
    %15 = tpu.matmul %13, %12, %cst_13 {dimension_numbers = #tpu.dot_dimension_numbers<[1], [0], [0], [1], [0, 0, 1, 1], [], []>} : vector<8x128xf32>, vector<128x512xf32>, vector<8x512xf32> -> vector<8x512xf32>
    %16 = vector.extract_strided_slice %11 {offsets = [0, 0, 0], sizes = [1, 8, 512], strides = [1, 1, 1]} : vector<8x8x512xf32> to vector<1x8x512xf32>
    %17 = vector.shape_cast %16 : vector<1x8x512xf32> to vector<8x512xf32>
    %18 = arith.addf %15, %17 : vector<8x512xf32>
    %19 = vector.extract_strided_slice %18 {offsets = [0, 0], sizes = [8, 128], strides = [1, 1]} : vector<8x512xf32> to vector<8x128xf32>
    %cst_14 = arith.constant 5.000000e-01 : f32
    %20 = vector.broadcast %cst_14 : f32 to vector<8x128xf32>
    %21 = arith.mulf %20, %19 : vector<8x128xf32>
    %22 = math.tanh %21 : vector<8x128xf32>
    %cst_15 = arith.constant 5.000000e-01 : f32
    %23 = vector.broadcast %cst_15 : f32 to vector<8x128xf32>
    %24 = arith.mulf %23, %22 : vector<8x128xf32>
    %cst_16 = arith.constant 5.000000e-01 : f32
    %25 = vector.broadcast %cst_16 : f32 to vector<8x128xf32>
    %26 = arith.addf %24, %25 : vector<8x128xf32>
    %27 = vector.extract_strided_slice %18 {offsets = [0, 128], sizes = [8, 128], strides = [1, 1]} : vector<8x512xf32> to vector<8x128xf32>
    %cst_17 = arith.constant 5.000000e-01 : f32
    %28 = vector.broadcast %cst_17 : f32 to vector<8x128xf32>
    %29 = arith.mulf %28, %27 : vector<8x128xf32>
    %30 = math.tanh %29 : vector<8x128xf32>
    %cst_18 = arith.constant 5.000000e-01 : f32
    %31 = vector.broadcast %cst_18 : f32 to vector<8x128xf32>
    %32 = arith.mulf %31, %30 : vector<8x128xf32>
    %cst_19 = arith.constant 5.000000e-01 : f32
    %33 = vector.broadcast %cst_19 : f32 to vector<8x128xf32>
    %34 = arith.addf %32, %33 : vector<8x128xf32>
    %35 = vector.extract_strided_slice %18 {offsets = [0, 256], sizes = [8, 128], strides = [1, 1]} : vector<8x512xf32> to vector<8x128xf32>
    %36 = math.tanh %35 : vector<8x128xf32>
    %37 = vector.extract_strided_slice %18 {offsets = [0, 384], sizes = [8, 128], strides = [1, 1]} : vector<8x512xf32> to vector<8x128xf32>
    %cst_20 = arith.constant 5.000000e-01 : f32
    %38 = vector.broadcast %cst_20 : f32 to vector<8x128xf32>
    %39 = arith.mulf %38, %37 : vector<8x128xf32>
    %40 = math.tanh %39 : vector<8x128xf32>
    %cst_21 = arith.constant 5.000000e-01 : f32
    %41 = vector.broadcast %cst_21 : f32 to vector<8x128xf32>
    %42 = arith.mulf %41, %40 : vector<8x128xf32>
    %cst_22 = arith.constant 5.000000e-01 : f32
    %43 = vector.broadcast %cst_22 : f32 to vector<8x128xf32>
    %44 = arith.addf %42, %43 : vector<8x128xf32>
    %45 = arith.mulf %34, %14 : vector<8x128xf32>
    %46 = arith.mulf %26, %36 : vector<8x128xf32>
    %47 = arith.addf %45, %46 : vector<8x128xf32>
    %48 = math.tanh %47 : vector<8x128xf32>
    %49 = arith.mulf %44, %48 : vector<8x128xf32>
    %cst_23 = arith.constant dense<0.000000e+00> : vector<8x512xf32>
    %50 = tpu.matmul %49, %12, %cst_23 {dimension_numbers = #tpu.dot_dimension_numbers<[1], [0], [0], [1], [0, 0, 1, 1], [], []>} : vector<8x128xf32>, vector<128x512xf32>, vector<8x512xf32> -> vector<8x512xf32>
    %51 = vector.extract_strided_slice %11 {offsets = [1, 0, 0], sizes = [1, 8, 512], strides = [1, 1, 1]} : vector<8x8x512xf32> to vector<1x8x512xf32>
    %52 = vector.shape_cast %51 : vector<1x8x512xf32> to vector<8x512xf32>
    %53 = arith.addf %50, %52 : vector<8x512xf32>
    %54 = vector.extract_strided_slice %53 {offsets = [0, 0], sizes = [8, 128], strides = [1, 1]} : vector<8x512xf32> to vector<8x128xf32>
    %cst_24 = arith.constant 5.000000e-01 : f32
    %55 = vector.broadcast %cst_24 : f32 to vector<8x128xf32>
    %56 = arith.mulf %55, %54 : vector<8x128xf32>
    %57 = math.tanh %56 : vector<8x128xf32>
    %cst_25 = arith.constant 5.000000e-01 : f32
    %58 = vector.broadcast %cst_25 : f32 to vector<8x128xf32>
    %59 = arith.mulf %58, %57 : vector<8x128xf32>
    %cst_26 = arith.constant 5.000000e-01 : f32
    %60 = vector.broadcast %cst_26 : f32 to vector<8x128xf32>
    %61 = arith.addf %59, %60 : vector<8x128xf32>
    %62 = vector.extract_strided_slice %53 {offsets = [0, 128], sizes = [8, 128], strides = [1, 1]} : vector<8x512xf32> to vector<8x128xf32>
    %cst_27 = arith.constant 5.000000e-01 : f32
    %63 = vector.broadcast %cst_27 : f32 to vector<8x128xf32>
    %64 = arith.mulf %63, %62 : vector<8x128xf32>
    %65 = math.tanh %64 : vector<8x128xf32>
    %cst_28 = arith.constant 5.000000e-01 : f32
    %66 = vector.broadcast %cst_28 : f32 to vector<8x128xf32>
    %67 = arith.mulf %66, %65 : vector<8x128xf32>
    %cst_29 = arith.constant 5.000000e-01 : f32
    %68 = vector.broadcast %cst_29 : f32 to vector<8x128xf32>
    %69 = arith.addf %67, %68 : vector<8x128xf32>
    %70 = vector.extract_strided_slice %53 {offsets = [0, 256], sizes = [8, 128], strides = [1, 1]} : vector<8x512xf32> to vector<8x128xf32>
    %71 = math.tanh %70 : vector<8x128xf32>
    %72 = vector.extract_strided_slice %53 {offsets = [0, 384], sizes = [8, 128], strides = [1, 1]} : vector<8x512xf32> to vector<8x128xf32>
    %cst_30 = arith.constant 5.000000e-01 : f32
    %73 = vector.broadcast %cst_30 : f32 to vector<8x128xf32>
    %74 = arith.mulf %73, %72 : vector<8x128xf32>
    %75 = math.tanh %74 : vector<8x128xf32>
    %cst_31 = arith.constant 5.000000e-01 : f32
    %76 = vector.broadcast %cst_31 : f32 to vector<8x128xf32>
    %77 = arith.mulf %76, %75 : vector<8x128xf32>
    %cst_32 = arith.constant 5.000000e-01 : f32
    %78 = vector.broadcast %cst_32 : f32 to vector<8x128xf32>
    %79 = arith.addf %77, %78 : vector<8x128xf32>
    %80 = arith.mulf %69, %47 : vector<8x128xf32>
    %81 = arith.mulf %61, %71 : vector<8x128xf32>
    %82 = arith.addf %80, %81 : vector<8x128xf32>
    %83 = math.tanh %82 : vector<8x128xf32>
    %84 = arith.mulf %79, %83 : vector<8x128xf32>
    %cst_33 = arith.constant dense<0.000000e+00> : vector<8x512xf32>
    %85 = tpu.matmul %84, %12, %cst_33 {dimension_numbers = #tpu.dot_dimension_numbers<[1], [0], [0], [1], [0, 0, 1, 1], [], []>} : vector<8x128xf32>, vector<128x512xf32>, vector<8x512xf32> -> vector<8x512xf32>
    %86 = vector.extract_strided_slice %11 {offsets = [2, 0, 0], sizes = [1, 8, 512], strides = [1, 1, 1]} : vector<8x8x512xf32> to vector<1x8x512xf32>
    %87 = vector.shape_cast %86 : vector<1x8x512xf32> to vector<8x512xf32>
    %88 = arith.addf %85, %87 : vector<8x512xf32>
    %89 = vector.extract_strided_slice %88 {offsets = [0, 0], sizes = [8, 128], strides = [1, 1]} : vector<8x512xf32> to vector<8x128xf32>
    %cst_34 = arith.constant 5.000000e-01 : f32
    %90 = vector.broadcast %cst_34 : f32 to vector<8x128xf32>
    %91 = arith.mulf %90, %89 : vector<8x128xf32>
    %92 = math.tanh %91 : vector<8x128xf32>
    %cst_35 = arith.constant 5.000000e-01 : f32
    %93 = vector.broadcast %cst_35 : f32 to vector<8x128xf32>
    %94 = arith.mulf %93, %92 : vector<8x128xf32>
    %cst_36 = arith.constant 5.000000e-01 : f32
    %95 = vector.broadcast %cst_36 : f32 to vector<8x128xf32>
    %96 = arith.addf %94, %95 : vector<8x128xf32>
    %97 = vector.extract_strided_slice %88 {offsets = [0, 128], sizes = [8, 128], strides = [1, 1]} : vector<8x512xf32> to vector<8x128xf32>
    %cst_37 = arith.constant 5.000000e-01 : f32
    %98 = vector.broadcast %cst_37 : f32 to vector<8x128xf32>
    %99 = arith.mulf %98, %97 : vector<8x128xf32>
    %100 = math.tanh %99 : vector<8x128xf32>
    %cst_38 = arith.constant 5.000000e-01 : f32
    %101 = vector.broadcast %cst_38 : f32 to vector<8x128xf32>
    %102 = arith.mulf %101, %100 : vector<8x128xf32>
    %cst_39 = arith.constant 5.000000e-01 : f32
    %103 = vector.broadcast %cst_39 : f32 to vector<8x128xf32>
    %104 = arith.addf %102, %103 : vector<8x128xf32>
    %105 = vector.extract_strided_slice %88 {offsets = [0, 256], sizes = [8, 128], strides = [1, 1]} : vector<8x512xf32> to vector<8x128xf32>
    %106 = math.tanh %105 : vector<8x128xf32>
    %107 = vector.extract_strided_slice %88 {offsets = [0, 384], sizes = [8, 128], strides = [1, 1]} : vector<8x512xf32> to vector<8x128xf32>
    %cst_40 = arith.constant 5.000000e-01 : f32
    %108 = vector.broadcast %cst_40 : f32 to vector<8x128xf32>
    %109 = arith.mulf %108, %107 : vector<8x128xf32>
    %110 = math.tanh %109 : vector<8x128xf32>
    %cst_41 = arith.constant 5.000000e-01 : f32
    %111 = vector.broadcast %cst_41 : f32 to vector<8x128xf32>
    %112 = arith.mulf %111, %110 : vector<8x128xf32>
    %cst_42 = arith.constant 5.000000e-01 : f32
    %113 = vector.broadcast %cst_42 : f32 to vector<8x128xf32>
    %114 = arith.addf %112, %113 : vector<8x128xf32>
    %115 = arith.mulf %104, %82 : vector<8x128xf32>
    %116 = arith.mulf %96, %106 : vector<8x128xf32>
    %117 = arith.addf %115, %116 : vector<8x128xf32>
    %118 = math.tanh %117 : vector<8x128xf32>
    %119 = arith.mulf %114, %118 : vector<8x128xf32>
    %cst_43 = arith.constant dense<0.000000e+00> : vector<8x512xf32>
    %120 = tpu.matmul %119, %12, %cst_43 {dimension_numbers = #tpu.dot_dimension_numbers<[1], [0], [0], [1], [0, 0, 1, 1], [], []>} : vector<8x128xf32>, vector<128x512xf32>, vector<8x512xf32> -> vector<8x512xf32>
    %121 = vector.extract_strided_slice %11 {offsets = [3, 0, 0], sizes = [1, 8, 512], strides = [1, 1, 1]} : vector<8x8x512xf32> to vector<1x8x512xf32>
    %122 = vector.shape_cast %121 : vector<1x8x512xf32> to vector<8x512xf32>
    %123 = arith.addf %120, %122 : vector<8x512xf32>
    %124 = vector.extract_strided_slice %123 {offsets = [0, 0], sizes = [8, 128], strides = [1, 1]} : vector<8x512xf32> to vector<8x128xf32>
    %cst_44 = arith.constant 5.000000e-01 : f32
    %125 = vector.broadcast %cst_44 : f32 to vector<8x128xf32>
    %126 = arith.mulf %125, %124 : vector<8x128xf32>
    %127 = math.tanh %126 : vector<8x128xf32>
    %cst_45 = arith.constant 5.000000e-01 : f32
    %128 = vector.broadcast %cst_45 : f32 to vector<8x128xf32>
    %129 = arith.mulf %128, %127 : vector<8x128xf32>
    %cst_46 = arith.constant 5.000000e-01 : f32
    %130 = vector.broadcast %cst_46 : f32 to vector<8x128xf32>
    %131 = arith.addf %129, %130 : vector<8x128xf32>
    %132 = vector.extract_strided_slice %123 {offsets = [0, 128], sizes = [8, 128], strides = [1, 1]} : vector<8x512xf32> to vector<8x128xf32>
    %cst_47 = arith.constant 5.000000e-01 : f32
    %133 = vector.broadcast %cst_47 : f32 to vector<8x128xf32>
    %134 = arith.mulf %133, %132 : vector<8x128xf32>
    %135 = math.tanh %134 : vector<8x128xf32>
    %cst_48 = arith.constant 5.000000e-01 : f32
    %136 = vector.broadcast %cst_48 : f32 to vector<8x128xf32>
    %137 = arith.mulf %136, %135 : vector<8x128xf32>
    %cst_49 = arith.constant 5.000000e-01 : f32
    %138 = vector.broadcast %cst_49 : f32 to vector<8x128xf32>
    %139 = arith.addf %137, %138 : vector<8x128xf32>
    %140 = vector.extract_strided_slice %123 {offsets = [0, 256], sizes = [8, 128], strides = [1, 1]} : vector<8x512xf32> to vector<8x128xf32>
    %141 = math.tanh %140 : vector<8x128xf32>
    %142 = vector.extract_strided_slice %123 {offsets = [0, 384], sizes = [8, 128], strides = [1, 1]} : vector<8x512xf32> to vector<8x128xf32>
    %cst_50 = arith.constant 5.000000e-01 : f32
    %143 = vector.broadcast %cst_50 : f32 to vector<8x128xf32>
    %144 = arith.mulf %143, %142 : vector<8x128xf32>
    %145 = math.tanh %144 : vector<8x128xf32>
    %cst_51 = arith.constant 5.000000e-01 : f32
    %146 = vector.broadcast %cst_51 : f32 to vector<8x128xf32>
    %147 = arith.mulf %146, %145 : vector<8x128xf32>
    %cst_52 = arith.constant 5.000000e-01 : f32
    %148 = vector.broadcast %cst_52 : f32 to vector<8x128xf32>
    %149 = arith.addf %147, %148 : vector<8x128xf32>
    %150 = arith.mulf %139, %117 : vector<8x128xf32>
    %151 = arith.mulf %131, %141 : vector<8x128xf32>
    %152 = arith.addf %150, %151 : vector<8x128xf32>
    %153 = math.tanh %152 : vector<8x128xf32>
    %154 = arith.mulf %149, %153 : vector<8x128xf32>
    %cst_53 = arith.constant dense<0.000000e+00> : vector<8x512xf32>
    %155 = tpu.matmul %154, %12, %cst_53 {dimension_numbers = #tpu.dot_dimension_numbers<[1], [0], [0], [1], [0, 0, 1, 1], [], []>} : vector<8x128xf32>, vector<128x512xf32>, vector<8x512xf32> -> vector<8x512xf32>
    %156 = vector.extract_strided_slice %11 {offsets = [4, 0, 0], sizes = [1, 8, 512], strides = [1, 1, 1]} : vector<8x8x512xf32> to vector<1x8x512xf32>
    %157 = vector.shape_cast %156 : vector<1x8x512xf32> to vector<8x512xf32>
    %158 = arith.addf %155, %157 : vector<8x512xf32>
    %159 = vector.extract_strided_slice %158 {offsets = [0, 0], sizes = [8, 128], strides = [1, 1]} : vector<8x512xf32> to vector<8x128xf32>
    %cst_54 = arith.constant 5.000000e-01 : f32
    %160 = vector.broadcast %cst_54 : f32 to vector<8x128xf32>
    %161 = arith.mulf %160, %159 : vector<8x128xf32>
    %162 = math.tanh %161 : vector<8x128xf32>
    %cst_55 = arith.constant 5.000000e-01 : f32
    %163 = vector.broadcast %cst_55 : f32 to vector<8x128xf32>
    %164 = arith.mulf %163, %162 : vector<8x128xf32>
    %cst_56 = arith.constant 5.000000e-01 : f32
    %165 = vector.broadcast %cst_56 : f32 to vector<8x128xf32>
    %166 = arith.addf %164, %165 : vector<8x128xf32>
    %167 = vector.extract_strided_slice %158 {offsets = [0, 128], sizes = [8, 128], strides = [1, 1]} : vector<8x512xf32> to vector<8x128xf32>
    %cst_57 = arith.constant 5.000000e-01 : f32
    %168 = vector.broadcast %cst_57 : f32 to vector<8x128xf32>
    %169 = arith.mulf %168, %167 : vector<8x128xf32>
    %170 = math.tanh %169 : vector<8x128xf32>
    %cst_58 = arith.constant 5.000000e-01 : f32
    %171 = vector.broadcast %cst_58 : f32 to vector<8x128xf32>
    %172 = arith.mulf %171, %170 : vector<8x128xf32>
    %cst_59 = arith.constant 5.000000e-01 : f32
    %173 = vector.broadcast %cst_59 : f32 to vector<8x128xf32>
    %174 = arith.addf %172, %173 : vector<8x128xf32>
    %175 = vector.extract_strided_slice %158 {offsets = [0, 256], sizes = [8, 128], strides = [1, 1]} : vector<8x512xf32> to vector<8x128xf32>
    %176 = math.tanh %175 : vector<8x128xf32>
    %177 = vector.extract_strided_slice %158 {offsets = [0, 384], sizes = [8, 128], strides = [1, 1]} : vector<8x512xf32> to vector<8x128xf32>
    %cst_60 = arith.constant 5.000000e-01 : f32
    %178 = vector.broadcast %cst_60 : f32 to vector<8x128xf32>
    %179 = arith.mulf %178, %177 : vector<8x128xf32>
    %180 = math.tanh %179 : vector<8x128xf32>
    %cst_61 = arith.constant 5.000000e-01 : f32
    %181 = vector.broadcast %cst_61 : f32 to vector<8x128xf32>
    %182 = arith.mulf %181, %180 : vector<8x128xf32>
    %cst_62 = arith.constant 5.000000e-01 : f32
    %183 = vector.broadcast %cst_62 : f32 to vector<8x128xf32>
    %184 = arith.addf %182, %183 : vector<8x128xf32>
    %185 = arith.mulf %174, %152 : vector<8x128xf32>
    %186 = arith.mulf %166, %176 : vector<8x128xf32>
    %187 = arith.addf %185, %186 : vector<8x128xf32>
    %188 = math.tanh %187 : vector<8x128xf32>
    %189 = arith.mulf %184, %188 : vector<8x128xf32>
    %cst_63 = arith.constant dense<0.000000e+00> : vector<8x512xf32>
    %190 = tpu.matmul %189, %12, %cst_63 {dimension_numbers = #tpu.dot_dimension_numbers<[1], [0], [0], [1], [0, 0, 1, 1], [], []>} : vector<8x128xf32>, vector<128x512xf32>, vector<8x512xf32> -> vector<8x512xf32>
    %191 = vector.extract_strided_slice %11 {offsets = [5, 0, 0], sizes = [1, 8, 512], strides = [1, 1, 1]} : vector<8x8x512xf32> to vector<1x8x512xf32>
    %192 = vector.shape_cast %191 : vector<1x8x512xf32> to vector<8x512xf32>
    %193 = arith.addf %190, %192 : vector<8x512xf32>
    %194 = vector.extract_strided_slice %193 {offsets = [0, 0], sizes = [8, 128], strides = [1, 1]} : vector<8x512xf32> to vector<8x128xf32>
    %cst_64 = arith.constant 5.000000e-01 : f32
    %195 = vector.broadcast %cst_64 : f32 to vector<8x128xf32>
    %196 = arith.mulf %195, %194 : vector<8x128xf32>
    %197 = math.tanh %196 : vector<8x128xf32>
    %cst_65 = arith.constant 5.000000e-01 : f32
    %198 = vector.broadcast %cst_65 : f32 to vector<8x128xf32>
    %199 = arith.mulf %198, %197 : vector<8x128xf32>
    %cst_66 = arith.constant 5.000000e-01 : f32
    %200 = vector.broadcast %cst_66 : f32 to vector<8x128xf32>
    %201 = arith.addf %199, %200 : vector<8x128xf32>
    %202 = vector.extract_strided_slice %193 {offsets = [0, 128], sizes = [8, 128], strides = [1, 1]} : vector<8x512xf32> to vector<8x128xf32>
    %cst_67 = arith.constant 5.000000e-01 : f32
    %203 = vector.broadcast %cst_67 : f32 to vector<8x128xf32>
    %204 = arith.mulf %203, %202 : vector<8x128xf32>
    %205 = math.tanh %204 : vector<8x128xf32>
    %cst_68 = arith.constant 5.000000e-01 : f32
    %206 = vector.broadcast %cst_68 : f32 to vector<8x128xf32>
    %207 = arith.mulf %206, %205 : vector<8x128xf32>
    %cst_69 = arith.constant 5.000000e-01 : f32
    %208 = vector.broadcast %cst_69 : f32 to vector<8x128xf32>
    %209 = arith.addf %207, %208 : vector<8x128xf32>
    %210 = vector.extract_strided_slice %193 {offsets = [0, 256], sizes = [8, 128], strides = [1, 1]} : vector<8x512xf32> to vector<8x128xf32>
    %211 = math.tanh %210 : vector<8x128xf32>
    %212 = vector.extract_strided_slice %193 {offsets = [0, 384], sizes = [8, 128], strides = [1, 1]} : vector<8x512xf32> to vector<8x128xf32>
    %cst_70 = arith.constant 5.000000e-01 : f32
    %213 = vector.broadcast %cst_70 : f32 to vector<8x128xf32>
    %214 = arith.mulf %213, %212 : vector<8x128xf32>
    %215 = math.tanh %214 : vector<8x128xf32>
    %cst_71 = arith.constant 5.000000e-01 : f32
    %216 = vector.broadcast %cst_71 : f32 to vector<8x128xf32>
    %217 = arith.mulf %216, %215 : vector<8x128xf32>
    %cst_72 = arith.constant 5.000000e-01 : f32
    %218 = vector.broadcast %cst_72 : f32 to vector<8x128xf32>
    %219 = arith.addf %217, %218 : vector<8x128xf32>
    %220 = arith.mulf %209, %187 : vector<8x128xf32>
    %221 = arith.mulf %201, %211 : vector<8x128xf32>
    %222 = arith.addf %220, %221 : vector<8x128xf32>
    %223 = math.tanh %222 : vector<8x128xf32>
    %224 = arith.mulf %219, %223 : vector<8x128xf32>
    %cst_73 = arith.constant dense<0.000000e+00> : vector<8x512xf32>
    %225 = tpu.matmul %224, %12, %cst_73 {dimension_numbers = #tpu.dot_dimension_numbers<[1], [0], [0], [1], [0, 0, 1, 1], [], []>} : vector<8x128xf32>, vector<128x512xf32>, vector<8x512xf32> -> vector<8x512xf32>
    %226 = vector.extract_strided_slice %11 {offsets = [6, 0, 0], sizes = [1, 8, 512], strides = [1, 1, 1]} : vector<8x8x512xf32> to vector<1x8x512xf32>
    %227 = vector.shape_cast %226 : vector<1x8x512xf32> to vector<8x512xf32>
    %228 = arith.addf %225, %227 : vector<8x512xf32>
    %229 = vector.extract_strided_slice %228 {offsets = [0, 0], sizes = [8, 128], strides = [1, 1]} : vector<8x512xf32> to vector<8x128xf32>
    %cst_74 = arith.constant 5.000000e-01 : f32
    %230 = vector.broadcast %cst_74 : f32 to vector<8x128xf32>
    %231 = arith.mulf %230, %229 : vector<8x128xf32>
    %232 = math.tanh %231 : vector<8x128xf32>
    %cst_75 = arith.constant 5.000000e-01 : f32
    %233 = vector.broadcast %cst_75 : f32 to vector<8x128xf32>
    %234 = arith.mulf %233, %232 : vector<8x128xf32>
    %cst_76 = arith.constant 5.000000e-01 : f32
    %235 = vector.broadcast %cst_76 : f32 to vector<8x128xf32>
    %236 = arith.addf %234, %235 : vector<8x128xf32>
    %237 = vector.extract_strided_slice %228 {offsets = [0, 128], sizes = [8, 128], strides = [1, 1]} : vector<8x512xf32> to vector<8x128xf32>
    %cst_77 = arith.constant 5.000000e-01 : f32
    %238 = vector.broadcast %cst_77 : f32 to vector<8x128xf32>
    %239 = arith.mulf %238, %237 : vector<8x128xf32>
    %240 = math.tanh %239 : vector<8x128xf32>
    %cst_78 = arith.constant 5.000000e-01 : f32
    %241 = vector.broadcast %cst_78 : f32 to vector<8x128xf32>
    %242 = arith.mulf %241, %240 : vector<8x128xf32>
    %cst_79 = arith.constant 5.000000e-01 : f32
    %243 = vector.broadcast %cst_79 : f32 to vector<8x128xf32>
    %244 = arith.addf %242, %243 : vector<8x128xf32>
    %245 = vector.extract_strided_slice %228 {offsets = [0, 256], sizes = [8, 128], strides = [1, 1]} : vector<8x512xf32> to vector<8x128xf32>
    %246 = math.tanh %245 : vector<8x128xf32>
    %247 = vector.extract_strided_slice %228 {offsets = [0, 384], sizes = [8, 128], strides = [1, 1]} : vector<8x512xf32> to vector<8x128xf32>
    %cst_80 = arith.constant 5.000000e-01 : f32
    %248 = vector.broadcast %cst_80 : f32 to vector<8x128xf32>
    %249 = arith.mulf %248, %247 : vector<8x128xf32>
    %250 = math.tanh %249 : vector<8x128xf32>
    %cst_81 = arith.constant 5.000000e-01 : f32
    %251 = vector.broadcast %cst_81 : f32 to vector<8x128xf32>
    %252 = arith.mulf %251, %250 : vector<8x128xf32>
    %cst_82 = arith.constant 5.000000e-01 : f32
    %253 = vector.broadcast %cst_82 : f32 to vector<8x128xf32>
    %254 = arith.addf %252, %253 : vector<8x128xf32>
    %255 = arith.mulf %244, %222 : vector<8x128xf32>
    %256 = arith.mulf %236, %246 : vector<8x128xf32>
    %257 = arith.addf %255, %256 : vector<8x128xf32>
    %258 = math.tanh %257 : vector<8x128xf32>
    %259 = arith.mulf %254, %258 : vector<8x128xf32>
    %cst_83 = arith.constant dense<0.000000e+00> : vector<8x512xf32>
    %260 = tpu.matmul %259, %12, %cst_83 {dimension_numbers = #tpu.dot_dimension_numbers<[1], [0], [0], [1], [0, 0, 1, 1], [], []>} : vector<8x128xf32>, vector<128x512xf32>, vector<8x512xf32> -> vector<8x512xf32>
    %261 = vector.extract_strided_slice %11 {offsets = [7, 0, 0], sizes = [1, 8, 512], strides = [1, 1, 1]} : vector<8x8x512xf32> to vector<1x8x512xf32>
    %262 = vector.shape_cast %261 : vector<1x8x512xf32> to vector<8x512xf32>
    %263 = arith.addf %260, %262 : vector<8x512xf32>
    %264 = vector.extract_strided_slice %263 {offsets = [0, 0], sizes = [8, 128], strides = [1, 1]} : vector<8x512xf32> to vector<8x128xf32>
    %cst_84 = arith.constant 5.000000e-01 : f32
    %265 = vector.broadcast %cst_84 : f32 to vector<8x128xf32>
    %266 = arith.mulf %265, %264 : vector<8x128xf32>
    %267 = math.tanh %266 : vector<8x128xf32>
    %cst_85 = arith.constant 5.000000e-01 : f32
    %268 = vector.broadcast %cst_85 : f32 to vector<8x128xf32>
    %269 = arith.mulf %268, %267 : vector<8x128xf32>
    %cst_86 = arith.constant 5.000000e-01 : f32
    %270 = vector.broadcast %cst_86 : f32 to vector<8x128xf32>
    %271 = arith.addf %269, %270 : vector<8x128xf32>
    %272 = vector.extract_strided_slice %263 {offsets = [0, 128], sizes = [8, 128], strides = [1, 1]} : vector<8x512xf32> to vector<8x128xf32>
    %cst_87 = arith.constant 5.000000e-01 : f32
    %273 = vector.broadcast %cst_87 : f32 to vector<8x128xf32>
    %274 = arith.mulf %273, %272 : vector<8x128xf32>
    %275 = math.tanh %274 : vector<8x128xf32>
    %cst_88 = arith.constant 5.000000e-01 : f32
    %276 = vector.broadcast %cst_88 : f32 to vector<8x128xf32>
    %277 = arith.mulf %276, %275 : vector<8x128xf32>
    %cst_89 = arith.constant 5.000000e-01 : f32
    %278 = vector.broadcast %cst_89 : f32 to vector<8x128xf32>
    %279 = arith.addf %277, %278 : vector<8x128xf32>
    %280 = vector.extract_strided_slice %263 {offsets = [0, 256], sizes = [8, 128], strides = [1, 1]} : vector<8x512xf32> to vector<8x128xf32>
    %281 = math.tanh %280 : vector<8x128xf32>
    %282 = vector.extract_strided_slice %263 {offsets = [0, 384], sizes = [8, 128], strides = [1, 1]} : vector<8x512xf32> to vector<8x128xf32>
    %cst_90 = arith.constant 5.000000e-01 : f32
    %283 = vector.broadcast %cst_90 : f32 to vector<8x128xf32>
    %284 = arith.mulf %283, %282 : vector<8x128xf32>
    %285 = math.tanh %284 : vector<8x128xf32>
    %cst_91 = arith.constant 5.000000e-01 : f32
    %286 = vector.broadcast %cst_91 : f32 to vector<8x128xf32>
    %287 = arith.mulf %286, %285 : vector<8x128xf32>
    %cst_92 = arith.constant 5.000000e-01 : f32
    %288 = vector.broadcast %cst_92 : f32 to vector<8x128xf32>
    %289 = arith.addf %287, %288 : vector<8x128xf32>
    %290 = arith.mulf %279, %257 : vector<8x128xf32>
    %291 = arith.mulf %271, %281 : vector<8x128xf32>
    %292 = arith.addf %290, %291 : vector<8x128xf32>
    %293 = math.tanh %292 : vector<8x128xf32>
    %294 = arith.mulf %289, %293 : vector<8x128xf32>
    %c0_93 = arith.constant 0 : index
    %c0_94 = arith.constant 0 : index
    %295 = vector.load %arg12[%c0_93, %c0_94] : memref<8x128xf32, #tpu.memory_space<vmem>>, vector<8x128xf32>
    tpu.vector_store %arg12[%c0_93, %c0_94], %294 {strides = array<i32>} : memref<8x128xf32, #tpu.memory_space<vmem>>, vector<8x128xf32>,
    %c0_95 = arith.constant 0 : index
    %c0_96 = arith.constant 0 : index
    %296 = vector.load %arg13[%c0_95, %c0_96] : memref<8x128xf32, #tpu.memory_space<vmem>>, vector<8x128xf32>
    tpu.vector_store %arg13[%c0_95, %c0_96], %292 {strides = array<i32>} : memref<8x128xf32, #tpu.memory_space<vmem>>, vector<8x128xf32>,
    %c0_i32_97 = arith.constant 0 : i32
    %297 = arith.cmpi eq, %arg1, %c0_i32_97 : i32
    %298 = arith.extui %297 : i1 to i32
    %c0_i32_98 = arith.constant 0 : i32
    %299 = arith.cmpi ne, %298, %c0_i32_98 : i32
    scf.if %299 {
      %300 = vector.extract_strided_slice %3 {offsets = [7, 0, 0], sizes = [1, 8, 8], strides = [1, 1, 1]} : vector<8x8x8xf32> to vector<1x8x8xf32>
      %301 = vector.shape_cast %300 : vector<1x8x8xf32> to vector<8x8xf32>
      %c0_99 = arith.constant 0 : index
      %c0_100 = arith.constant 0 : index
      %302 = vector.load %arg6[%c0_99, %c0_100] : memref<8x512xf32, #tpu.memory_space<vmem>>, vector<8x512xf32>
      %cst_101 = arith.constant dense<0.000000e+00> : vector<8x512xf32>
      %303 = tpu.matmul %301, %302, %cst_101 {dimension_numbers = #tpu.dot_dimension_numbers<[1], [0], [0], [1], [0, 0, 1, 1], [], []>} : vector<8x8xf32>, vector<8x512xf32>, vector<8x512xf32> -> vector<8x512xf32>
      %c0_102 = arith.constant 0 : index
      %c0_103 = arith.constant 0 : index
      %304 = vector.load %arg7[%c0_102, %c0_103] : memref<1x512xf32, #tpu.memory_space<vmem>>, vector<1x512xf32>
      %305 = vector.broadcast %304 : vector<1x512xf32> to vector<8x512xf32>
      %306 = arith.addf %303, %305 : vector<8x512xf32>
      %307 = vector.extract_strided_slice %306 {offsets = [0, 0], sizes = [8, 128], strides = [1, 1]} : vector<8x512xf32> to vector<8x128xf32>
      %cst_104 = arith.constant 5.000000e-01 : f32
      %308 = vector.broadcast %cst_104 : f32 to vector<8x128xf32>
      %309 = arith.mulf %308, %307 : vector<8x128xf32>
      %310 = math.tanh %309 : vector<8x128xf32>
      %cst_105 = arith.constant 5.000000e-01 : f32
      %311 = vector.broadcast %cst_105 : f32 to vector<8x128xf32>
      %312 = arith.mulf %311, %310 : vector<8x128xf32>
      %cst_106 = arith.constant 5.000000e-01 : f32
      %313 = vector.broadcast %cst_106 : f32 to vector<8x128xf32>
      %314 = arith.addf %312, %313 : vector<8x128xf32>
      %315 = vector.extract_strided_slice %306 {offsets = [0, 256], sizes = [8, 128], strides = [1, 1]} : vector<8x512xf32> to vector<8x128xf32>
      %316 = math.tanh %315 : vector<8x128xf32>
      %317 = vector.extract_strided_slice %306 {offsets = [0, 384], sizes = [8, 128], strides = [1, 1]} : vector<8x512xf32> to vector<8x128xf32>
      %cst_107 = arith.constant 5.000000e-01 : f32
      %318 = vector.broadcast %cst_107 : f32 to vector<8x128xf32>
      %319 = arith.mulf %318, %317 : vector<8x128xf32>
      %320 = math.tanh %319 : vector<8x128xf32>
      %cst_108 = arith.constant 5.000000e-01 : f32
      %321 = vector.broadcast %cst_108 : f32 to vector<8x128xf32>
      %322 = arith.mulf %321, %320 : vector<8x128xf32>
      %cst_109 = arith.constant 5.000000e-01 : f32
      %323 = vector.broadcast %cst_109 : f32 to vector<8x128xf32>
      %324 = arith.addf %322, %323 : vector<8x128xf32>
      %325 = arith.mulf %314, %316 : vector<8x128xf32>
      %326 = math.tanh %325 : vector<8x128xf32>
      %327 = arith.mulf %324, %326 : vector<8x128xf32>
      %c0_110 = arith.constant 0 : index
      %c0_111 = arith.constant 0 : index
      %328 = vector.load %arg8[%c0_110, %c0_111] : memref<128x128xf32, #tpu.memory_space<vmem>>, vector<128x128xf32>
      %cst_112 = arith.constant dense<0.000000e+00> : vector<8x128xf32>
      %329 = tpu.matmul %294, %328, %cst_112 {dimension_numbers = #tpu.dot_dimension_numbers<[1], [0], [0], [1], [0, 0, 1, 1], [], []>} : vector<8x128xf32>, vector<128x128xf32>, vector<8x128xf32> -> vector<8x128xf32>
      %c0_113 = arith.constant 0 : index
      %c0_114 = arith.constant 0 : index
      %330 = vector.load %arg9[%c0_113, %c0_114] : memref<128x128xf32, #tpu.memory_space<vmem>>, vector<128x128xf32>
      %cst_115 = arith.constant dense<0.000000e+00> : vector<8x128xf32>
      %331 = tpu.matmul %327, %330, %cst_115 {dimension_numbers = #tpu.dot_dimension_numbers<[1], [0], [0], [1], [0, 0, 1, 1], [], []>} : vector<8x128xf32>, vector<128x128xf32>, vector<8x128xf32> -> vector<8x128xf32>
      %332 = arith.addf %329, %331 : vector<8x128xf32>
      %c0_116 = arith.constant 0 : index
      %c0_117 = arith.constant 0 : index
      %333 = vector.load %arg10[%c0_116, %c0_117] : memref<1x128xf32, #tpu.memory_space<vmem>>, vector<1x128xf32>
      %334 = vector.broadcast %333 : vector<1x128xf32> to vector<8x128xf32>
      %335 = arith.addf %332, %334 : vector<8x128xf32>
      %c0_118 = arith.constant 0 : index
      %c0_119 = arith.constant 0 : index
      %336 = vector.load %arg11[%c0_118, %c0_119] : memref<8x128xf32, #tpu.memory_space<vmem>>, vector<8x128xf32>
      tpu.vector_store %arg11[%c0_118, %c0_119], %335 {strides = array<i32>} : memref<8x128xf32, #tpu.memory_space<vmem>>, vector<8x128xf32>,
    } else {
    }
    return
  }
  func.func @transform_0(%arg0: i32, %arg1: i32) -> (i32, i32, i32) {
    %c0_i32 = arith.constant 0 : i32
    %c0_i32_0 = arith.constant 0 : i32
    return %arg1, %arg0, %c0_i32 : i32, i32, i32
  }
  func.func @transform_1(%arg0: i32, %arg1: i32) -> (i32, i32) {
    %c0_i32 = arith.constant 0 : i32
    %c0_i32_0 = arith.constant 0 : i32
    %c0_i32_1 = arith.constant 0 : i32
    return %c0_i32, %c0_i32_0 : i32, i32
  }
  func.func @transform_2(%arg0: i32, %arg1: i32) -> (i32, i32) {
    %c0_i32 = arith.constant 0 : i32
    %c0_i32_0 = arith.constant 0 : i32
    %c0_i32_1 = arith.constant 0 : i32
    return %c0_i32, %c0_i32_0 : i32, i32
  }
  func.func @transform_3(%arg0: i32, %arg1: i32) -> (i32, i32) {
    %c0_i32 = arith.constant 0 : i32
    %c0_i32_0 = arith.constant 0 : i32
    %c0_i32_1 = arith.constant 0 : i32
    return %c0_i32, %c0_i32_0 : i32, i32
  }
  func.func @transform_4(%arg0: i32, %arg1: i32) -> (i32, i32) {
    %c0_i32 = arith.constant 0 : i32
    %c0_i32_0 = arith.constant 0 : i32
    %c0_i32_1 = arith.constant 0 : i32
    return %c0_i32, %c0_i32_0 : i32, i32
  }
  func.func @transform_5(%arg0: i32, %arg1: i32) -> (i32, i32) {
    %c0_i32 = arith.constant 0 : i32
    %c0_i32_0 = arith.constant 0 : i32
    %c0_i32_1 = arith.constant 0 : i32
    return %c0_i32, %c0_i32_0 : i32, i32
  }
  func.func @transform_6(%arg0: i32, %arg1: i32) -> (i32, i32) {
    %c0_i32 = arith.constant 0 : i32
    %c0_i32_0 = arith.constant 0 : i32
    %c0_i32_1 = arith.constant 0 : i32
    return %c0_i32, %c0_i32_0 : i32, i32
  }
  func.func @transform_7(%arg0: i32, %arg1: i32) -> (i32, i32) {
    %c0_i32 = arith.constant 0 : i32
    %c0_i32_0 = arith.constant 0 : i32
    %c0_i32_1 = arith.constant 0 : i32
    return %c0_i32, %c0_i32_0 : i32, i32
  }
  func.func @transform_8(%arg0: i32, %arg1: i32) -> (i32, i32) {
    %c0_i32 = arith.constant 0 : i32
    %c0_i32_0 = arith.constant 0 : i32
    %c0_i32_1 = arith.constant 0 : i32
    return %c0_i32, %c0_i32_0 : i32, i32
  }
  func.func @transform_9(%arg0: i32, %arg1: i32) -> (i32, i32) {
    %c0_i32 = arith.constant 0 : i32
    %c0_i32_0 = arith.constant 0 : i32
    return %arg0, %c0_i32 : i32, i32
  }
}

</mosaic_0001>

<bundles_post_ra>
// kernel: birnn_forward.1
= control target key start
LH: loop header
LB: loop body
LE: loop exit
PB: predicated region body
PF: predicated region fallthrough
CT: control target
= control target key end

     0   :  { %vm50_vm0 = vcmask 64512   ;;  %s3060_s1 = inlined_call_operand.vmem [shape: f32[8,512], index: 1, kind: input, shape index: {}]   ;;  %s3061_s0 = inlined_call_operand.vmem [shape: f32[8,8,8], index: 0, kind: input, shape index: {}]   ;;  %s3062_s2 = inlined_call_operand.vmem [shape: f32[128,512], index: 2, kind: input, shape index: {}]   ;;  %s3063_s3 = inlined_call_operand.vmem [shape: f32[1,512], index: 3, kind: input, shape index: {}]   ;;  %s3064_s4 = inlined_call_operand.vmem [shape: f32[8,512], index: 4, kind: input, shape index: {}]   ;;  %s3065_s6 = inlined_call_operand.vmem [shape: f32[128,128], index: 6, kind: input, shape index: {}]   ;;  %s3066_s7 = inlined_call_operand.vmem [shape: f32[128,128], index: 7, kind: input, shape index: {}]   ;;  %s3067_s5 = inlined_call_operand.vmem [shape: f32[1,512], index: 5, kind: input, shape index: {}]   ;;  %s3068_s8 = inlined_call_operand.vmem [shape: f32[1,128], index: 8, kind: input, shape index: {}]   ;;  %s3069_s9 = inlined_call_operand.vmem [shape: f32[8,128], index: 9, kind: output, shape index: {}]  }
   0x1   :  { %v46_v0 = vld [vmem:[%s3060_s1] sm:$0xff]  ;;  %v48_v1 = vld [vmem:[%s3060_s1 + $0x10] sm:$0xff]  ;;  %v49_v2 = vld [vmem:[%s3060_s1 + $0x18] sm:$0xff] }
   0x2   :  { %90 = vmatpush.msra.mxu0 %v46_v0  ;;  %1336 = vmatpush.msra.mxu1 %v46_v0  ;;  %v1555_v3 = vld [vmem:[%s3061_s0] sm:$0xff]  ;;  %v1560_v4 = vld [vmem:[%s3061_s0 + $0x30] sm:$0xff]  ;;  %v47_v5 = vld [vmem:[%s3060_s1 + $0x8] sm:$0xff] }
   0x3   :  { %172 = vmatpush.msra.mxu2 %v48_v1  ;;  %213 = vmatpush.msra.mxu3 %v49_v2  ;;  %v1572_v6 = vld [vmem:[%s3062_s2 + $0x1e8] sm:$0xff]  ;;  %v1577_v7 = vld [vmem:[%s3062_s2 + $0x1f0] sm:$0xff]  ;;  %v1582_v8 = vld [vmem:[%s3062_s2 + $0x1e0] sm:$0xff] }
   0x4   :  { %1301 = vmatmul.msk.f32.vlgmr.msra.gmra.mxu0 %vm50_vm0, %v1555_v3  ;;  %1307 = vmatmul.msk.f32.vlgmr.msra.gmra.mxu1 %vm50_vm0, %v1560_v4  ;;  %3164 = vst [vmem:[#allocation4_spill] sm:$0xff] %v1582_v8  ;;  %v1589_v9 = vld [vmem:[%s3062_s2 + $0x1c8] sm:$0xff]  ;;  %v1597_v10 = vld [vmem:[%s3062_s2 + $0x1c0] sm:$0xff]  ;;  %v1602_v11 = vld [vmem:[%s3062_s2 + $0x1d0] sm:$0xff] }
   0x5   :  { %131 = vmatpush.msrb.mxu1 %v47_v5  ;;  %1317 = vmatmul.msk.f32.vlgmr.msra.gmra.mxu2 %vm50_vm0, %v1555_v3  ;;  %3165 = vst [vmem:[#allocation5_spill] sm:$0xff] %v1597_v10  ;;  %v1607_v12 = vld [vmem:[%s3062_s2 + $0x1f8] sm:$0xff]  ;;  %v1614_v13 = vld [vmem:[%s3062_s2 + $0x1a8] sm:$0xff]  ;;  %v1620_v14 = vld [vmem:[%s3062_s2 + $0x1a0] sm:$0xff] }
   0x6   :  { %1325 = vmatmul.msk.f32.vlgmr.msra.gmra.mxu3 %vm50_vm0, %v1555_v3  ;;  %387 = vmatpush.msrb.mxu2 %v1577_v7  ;;  %v1626_v15 = vld [vmem:[%s3062_s2 + $0x1b0] sm:$0xff]  ;;  %v1631_v16 = vld [vmem:[%s3062_s2 + $0x1d8] sm:$0xff]  ;;  %v1636_v17 = vld [vmem:[%s3061_s0 + $0x8] sm:$0xff] }
   0x7   :  { %367 = vmatpush.msra.mxu1 %v1572_v6  ;;  %347 = vmatpush.msrb.mxu0 %v1582_v8  ;;  %v1641_v18 = vld [vmem:[%s3061_s0 + $0x38] sm:$0xff]  ;;  %v1648_v19 = vld [vmem:[%s3062_s2 + $0x180] sm:$0xff]  ;;  %v1657_v20 = vld [vmem:[%s3062_s2 + $0x188] sm:$0xff] }
   0x8   :  { %407 = vmatpush.msrb.mxu3 %v1607_v12  ;;  %388 = vmatpush.msrb.mxu2 %v1602_v11  ;;  %v1666_v21 = vld [vmem:[%s3062_s2 + $0x160] sm:$0xff]  ;;  %v1671_v22 = vld [vmem:[%s3062_s2 + $0x190] sm:$0xff]  ;;  %v1679_v23 = vld [vmem:[%s3062_s2 + $0x1b8] sm:$0xff] }
   0x9   :  { %368 = vmatpush.msra.mxu1 %v1589_v9  ;;  %348 = vmatpush.msrb.mxu0 %v1597_v10  ;;  %v1684_v24 = vld [vmem:[%s3062_s2 + $0x168] sm:$0xff]  ;;  %v1691_v25 = vld [vmem:[%s3062_s2 + $0x140] sm:$0xff]  ;;  %v1697_v26 = vld [vmem:[%s3062_s2 + $0x170] sm:$0xff] }
   0xa   :  { %408 = vmatpush.msrb.mxu3 %v1631_v16  ;;  %389 = vmatpush.msrb.mxu2 %v1626_v15  ;;  %v1704_v27 = vld [vmem:[%s3062_s2 + $0x198] sm:$0xff]  ;;  %v1709_v28 = vld [vmem:[%s3062_s2 + $0x148] sm:$0xff]  ;;  %v1714_v29 = vld [vmem:[%s3062_s2 + $0x120] sm:$0xff] }
   0xb   :  { %369 = vmatpush.msra.mxu1 %v1614_v13  ;;  %349 = vmatpush.msrb.mxu0 %v1620_v14  ;;  %v1721_v30 = vld [vmem:[%s3062_s2 + $0x150] sm:$0xff]  ;;  %v1733_v32 = vld [vmem:[%s3062_s2 + $0x100] sm:$0xff]  ;;  %v1742_v33 = vld [vmem:[%s3062_s2 + $0x128] sm:$0xff] }
   0xc   :  { %1302 = vmatmul.msk.f32.gmra.mxu0 %vm50_vm0, %v1636_v17  ;;  %1308 = vmatmul.msk.f32.gmra.mxu1 %vm50_vm0, %v1641_v18  ;;  %v1726_v31 = vld [vmem:[%s3061_s0 + $0x10] sm:$0xff]  ;;  %v1751_v34 = vld [vmem:[%s3062_s2 + $0xe0] sm:$0xff]  ;;  %v1756_v35 = vld [vmem:[%s3062_s2 + $0x178] sm:$0xff] }
   0xd   :  { %1318 = vmatmul.msk.f32.gmra.mxu2 %vm50_vm0, %v1636_v17  ;;  %350 = vmatpush.msrb.mxu0 %v1648_v19  ;;  %v1764_v36 = vld [vmem:[%s3062_s2 + $0x130] sm:$0xff]  ;;  %v1769_v37 = vld [vmem:[%s3062_s2 + $0x108] sm:$0xff]  ;;  %v1776_v38 = vld [vmem:[%s3062_s2 + $0xc0] sm:$0xff] }
   0xe   :  { %1326 = vmatmul.msk.f32.gmra.mxu3 %vm50_vm0, %v1636_v17  ;;  %370 = vmatpush.msra.mxu1 %v1657_v20  ;;  %v1782_v39 = vld [vmem:[%s3062_s2 + $0x158] sm:$0xff]  ;;  %v1789_v40 = vld [vmem:[%s3062_s2 + $0x110] sm:$0xff]  ;;  %v1794_v41 = vld [vmem:[%s3062_s2 + $0xe8] sm:$0xff] }
   0xf   :  { %351 = vmatpush.msrb.mxu0 %v1666_v21  ;;  %390 = vmatpush.msrb.mxu2 %v1671_v22  ;;  %v1799_v42 = vld [vmem:[%s3062_s2 + $0xa0] sm:$0xff]  ;;  %v1806_v43 = vld [vmem:[%s3062_s2 + $0x138] sm:$0xff]  ;;  %v1827_v46 = vld [vmem:[%s3062_s2 + $0xf0] sm:$0xff] }
  0x10   :  { %409 = vmatpush.msrb.mxu3 %v1679_v23  ;;  %371 = vmatpush.msra.mxu1 %v1684_v24  ;;  %3166 = vst [vmem:[#allocation6_spill] sm:$0xff] %v1799_v42  ;;  %v1811_v44 = vld [vmem:[%s3061_s0 + $0x18] sm:$0xff]  ;;  %v1818_v45 = vld [vmem:[%s3062_s2 + $0x80] sm:$0xff]  ;;  %v1849_v49 = vld [vmem:[%s3062_s2 + $0xd0] sm:$0xff] }
  0x11   :  { %352 = vmatpush.msrb.mxu0 %v1691_v25  ;;  %391 = vmatpush.msrb.mxu2 %v1697_v26  ;;  %3167 = vst [vmem:[#allocation7_spill] sm:$0xff] %v1818_v45  ;;  %v1836_v47 = vld [vmem:[%s3062_s2 + $0x60] sm:$0xff]  ;;  %v1841_v48 = vld [vmem:[%s3062_s2 + $0x118] sm:$0xff]  ;;  %v1854_v50 = vld [vmem:[%s3062_s2 + $0xc8] sm:$0xff] }
  0x12   :  { %410 = vmatpush.msrb.mxu3 %v1704_v27  ;;  %372 = vmatpush.msra.mxu1 %v1709_v28  ;;  %3168 = vst [vmem:[#allocation8_spill] sm:$0xff] %v1836_v47  ;;  %v1861_v51 = vld [vmem:[%s3062_s2 + $0x40] sm:$0xff]  ;;  %v1867_v52 = vld [vmem:[%s3062_s2 + $0xf8] sm:$0xff]  ;;  %v1874_v53 = vld [vmem:[%s3062_s2 + $0xb0] sm:$0xff] }
  0x13   :  { %353 = vmatpush.msrb.mxu0 %v1714_v29  ;;  %392 = vmatpush.msrb.mxu2 %v1721_v30  ;;  %3169 = vst [vmem:[#allocation9_spill] sm:$0xff] %v1861_v51  ;;  %v1879_v54 = vld [vmem:[%s3062_s2 + $0xa8] sm:$0xff]  ;;  %v1884_v55 = vld [vmem:[%s3062_s2 + $0x20] sm:$0xff]  ;;  %v1890_v56 = vld [vmem:[%s3062_s2 + $0xd8] sm:$0xff] }
  0x14   :  { %1303 = vmatmul.msk.f32.gmra.mxu0 %vm50_vm0, %v1726_v31  ;;  %1309 = vmatmul.msk.f32.vlgmr.msrb.gmra.mxu1 %vm50_vm0, %v1555_v3  ;;  %3170 = vst [vmem:[#allocation10_spill] sm:$0xff] %v1874_v53  ;;  %v42_v57 = vld [vmem:[%s3061_s0 + $0x20] sm:$0xff]  ;;  %v1910_v59 = vld [vmem:[%s3062_s2 + $0x90] sm:$0xff]  ;;  %v1918_v60 = vld [vmem:[%s3062_s2 + $0xb8] sm:$0xff] }
  0x15   :  { %1319 = vmatmul.msk.f32.gmra.mxu2 %vm50_vm0, %v1726_v31  ;;  %354 = vmatpush.msrb.mxu0 %v1733_v32  ;;  %3171 = vst [vmem:[#allocation11_spill] sm:$0xff] %v1879_v54  ;;  %v1901_v58 = vld [vmem:[%s3062_s2] sm:$0xff]  ;;  %v1923_v61 = vld [vmem:[%s3062_s2 + $0x88] sm:$0xff]  ;;  %v1930_v62 = vld [vmem:[%s3062_s2 + $0x70] sm:$0xff] }
  0x16   :  { %1327 = vmatmul.msk.f32.gmra.mxu3 %vm50_vm0, %v1726_v31  ;;  %373 = vmatpush.msra.mxu1 %v1742_v33  ;;  %3172 = vst [vmem:[#allocation12_spill] sm:$0xff] %v1884_v55  ;;  %v1937_v63 = vld [vmem:[%s3062_s2 + $0x98] sm:$0xff]  ;;  %v1942_v0 = vld [vmem:[%s3062_s2 + $0x68] sm:$0xff]  ;;  %v1948_v1 = vld [vmem:[%s3062_s2 + $0x50] sm:$0xff] }
  0x17   :  { %355 = vmatpush.msrb.mxu0 %v1751_v34  ;;  %411 = vmatpush.msrb.mxu3 %v1756_v35  ;;  %3173 = vst [vmem:[#allocation13_spill] sm:$0xff] %v1901_v58  ;;  %v1955_v2 = vld [vmem:[%s3062_s2 + $0x78] sm:$0xff]  ;;  %v1960_v3 = vld [vmem:[%s3062_s2 + $0x48] sm:$0xff] }
  0x18   :  { %393 = vmatpush.msrb.mxu2 %v1764_v36  ;;  %374 = vmatpush.msra.mxu1 %v1769_v37  ;;  %3174 = vst [vmem:[#allocation14_spill] sm:$0xff] %v1910_v59  ;;  %v43_v5 = vld [vmem:[%s3061_s0 + $0x28] sm:$0xff] }
  0x19   :  { %356 = vmatpush.msrb.mxu0 %v1776_v38  ;;  %412 = vmatpush.msrb.mxu3 %v1782_v39  ;;  %3175 = vst [vmem:[#allocation15_spill] sm:$0xff] %v1918_v60 }
  0x1a   :  { %394 = vmatpush.msrb.mxu2 %v1789_v40  ;;  %375 = vmatpush.msra.mxu1 %v1794_v41  ;;  %3176 = vst [vmem:[#allocation16_spill] sm:$0xff] %v1923_v61 }
  0x1b   :  { %357 = vmatpush.msrb.mxu0 %v1799_v42  ;;  %413 = vmatpush.msrb.mxu3 %v1806_v43  ;;  %3177 = vst [vmem:[#allocation17_spill] sm:$0xff] %v1930_v62 }
  0x1c   :  { %1304 = vmatmul.msk.f32.gmra.mxu0 %vm50_vm0, %v1811_v44  ;;  %1310 = vmatmul.msk.f32.gmra.mxu1 %vm50_vm0, %v1636_v17  ;;  %3178 = vst [vmem:[#allocation18_spill] sm:$0xff] %v1937_v63  ;;  %v1972_v17 = vld [vmem:[%s3062_s2 + $0x58] sm:$0xff] }
  0x1d   :  { %1320 = vmatmul.msk.f32.gmra.mxu2 %vm50_vm0, %v1811_v44  ;;  %358 = vmatpush.msrb.mxu0 %v1818_v45  ;;  %3179 = vst [vmem:[#allocation19_spill] sm:$0xff] %v1942_v0 }
  0x1e   :  { %1328 = vmatmul.msk.f32.gmra.mxu3 %vm50_vm0, %v1811_v44  ;;  %395 = vmatpush.msrb.mxu2 %v1827_v46  ;;  %3180 = vst [vmem:[#allocation20_spill] sm:$0xff] %v1948_v1 }
  0x1f   :  { %359 = vmatpush.msrb.mxu0 %v1836_v47  ;;  %414 = vmatpush.msrb.mxu3 %v1841_v48  ;;  %3181 = vst [vmem:[#allocation21_spill] sm:$0xff] %v1955_v2 }
  0x20   :  { %396 = vmatpush.msrb.mxu2 %v1849_v49  ;;  %376 = vmatpush.msra.mxu1 %v1854_v50  ;;  %3182 = vst [vmem:[#allocation22_spill] sm:$0xff] %v1960_v3 }
  0x21   :  { %360 = vmatpush.msrb.mxu0 %v1861_v51  ;;  %415 = vmatpush.msrb.mxu3 %v1867_v52  ;;  %3183 = vst [vmem:[#allocation23_spill] sm:$0xff] %v1972_v17 }
  0x22   :  { %397 = vmatpush.msrb.mxu2 %v1874_v53  ;;  %377 = vmatpush.msra.mxu1 %v1879_v54 }
  0x23   :  { %361 = vmatpush.msrb.mxu0 %v1884_v55  ;;  %416 = vmatpush.msrb.mxu3 %v1890_v56  ;;  %v2012_v55 = vld [vmem:[%s3062_s2 + $0x8] sm:$0xff] }
  0x24   :  { %1305 = vmatmul.msk.f32.gmra.mxu0 %vm50_vm0, %v42_v57  ;;  %1311 = vmatmul.msk.f32.gmra.mxu1 %vm50_vm0, %v1726_v31  ;;  %v1979_v31 = vld [vmem:[%s3062_s2 + $0x30] sm:$0xff]  ;;  %3189 = vst [vmem:[#allocation29_spill] sm:$0xff] %v2012_v55 }
  0x25   :  { %1321 = vmatmul.msk.f32.gmra.mxu2 %vm50_vm0, %v42_v57  ;;  %362 = vmatpush.msrb.mxu0 %v1901_v58  ;;  %3184 = vst [vmem:[#allocation24_spill] sm:$0xff] %v1979_v31  ;;  %v2000_v58 = vld [vmem:[%s3062_s2 + $0x10] sm:$0xff] }
  0x26   :  { %1329 = vmatmul.msk.f32.gmra.mxu3 %vm50_vm0, %v42_v57  ;;  %398 = vmatpush.msrb.mxu2 %v1910_v59  ;;  %3187 = vst [vmem:[#allocation27_spill] sm:$0xff] %v2000_v58 }
  0x27   :  { %417 = vmatpush.msrb.mxu3 %v1918_v60  ;;  %378 = vmatpush.msra.mxu1 %v1923_v61 }
  0x28   :  { %399 = vmatpush.msrb.mxu2 %v1930_v62  ;;  %445 = vmatpush.msra.mxu0 %v1582_v8  ;;  %v1988_v8 = vld [vmem:[%s3062_s2 + $0x38] sm:$0xff] }
  0x29   :  { %418 = vmatpush.msrb.mxu3 %v1937_v63  ;;  %379 = vmatpush.msra.mxu1 %v1942_v0  ;;  %3185 = vst [vmem:[#allocation25_spill] sm:$0xff] %v1988_v8 }
  0x2a   :  { %400 = vmatpush.msrb.mxu2 %v1948_v1  ;;  %446 = vmatpush.msra.mxu0 %v1597_v10  ;;  %v1993_v10 = vld [vmem:[%s3062_s2 + $0x28] sm:$0xff] }
  0x2b   :  { %419 = vmatpush.msrb.mxu3 %v1955_v2  ;;  %380 = vmatpush.msra.mxu1 %v1960_v3  ;;  %3186 = vst [vmem:[#allocation26_spill] sm:$0xff] %v1993_v10 }
  0x2c   :  { %1306 = vmatmul.msk.f32.gmra.mxu0 %vm50_vm0, %v43_v5  ;;  %1312 = vmatmul.msk.f32.gmra.mxu1 %vm50_vm0, %v1811_v44  ;;  %v2007_v44 = vld [vmem:[%s3062_s2 + $0x18] sm:$0xff] }
  0x2d   :  { %1322 = vmatmul.msk.f32.gmra.mxu2 %vm50_vm0, %v43_v5  ;;  %420 = vmatpush.msrb.mxu3 %v1972_v17  ;;  %3188 = vst [vmem:[#allocation28_spill] sm:$0xff] %v2007_v44 }
  0x2e   :  { %1330 = vmatmul.msk.f32.gmra.mxu3 %vm50_vm0, %v43_v5  ;;  %401 = vmatpush.msrb.mxu2 %v1979_v31 }
  0x2f   :  { %421 = vmatpush.msrb.mxu3 %v1988_v8  ;;  %381 = vmatpush.msra.mxu1 %v1993_v10  ;;  %v1492_v8 = vmov 0.0  }
  0x30   :  { %402 = vmatpush.msrb.mxu2 %v2000_v58  ;;  %447 = vmatpush.msra.mxu0 %v1620_v14 }
  0x31   :  { %422 = vmatpush.msrb.mxu3 %v2007_v44  ;;  %382 = vmatpush.msra.mxu1 %v2012_v55 }
  0x32   :  { %485 = vmatpush.msra.mxu2 %v1577_v7  ;;  %448 = vmatpush.msra.mxu0 %v1648_v19 }
  0x33   :  { %465 = vmatpush.msrb.mxu1 %v1572_v6  ;;  %505 = vmatpush.msra.mxu3 %v1607_v12 }
  0x34   :  { %1313 = vmatmul.msk.f32.gmra.mxu1 %vm50_vm0, %v42_v57  ;;  %363 = vmatmul.f32.vlgmr.msrb.gmra.mxu0 %v1492_v8  ;;  %v3192_v57 = vld [vmem:[#allocation13_spill] sm:$0xff] }
  0x35   :  { %1323 = vmatmul.msk.f32.gmra.mxu2 %vm50_vm0, %v1560_v4  ;;  %466 = vmatpush.msrb.mxu1 %v1589_v9 }
  0x36   :  { %1331 = vmatmul.msk.f32.gmra.mxu3 %vm50_vm0, %v1560_v4  ;;  %486 = vmatpush.msra.mxu2 %v1602_v11 }
  0x37   :  { %506 = vmatpush.msra.mxu3 %v1631_v16  ;;  %467 = vmatpush.msrb.mxu1 %v1614_v13 }
  0x38   :  { %487 = vmatpush.msra.mxu2 %v1626_v15  ;;  %449 = vmatpush.msra.mxu0 %v1666_v21 }
  0x39   :  { %507 = vmatpush.msra.mxu3 %v1679_v23  ;;  %468 = vmatpush.msrb.mxu1 %v1657_v20 }
  0x3a   :  { %488 = vmatpush.msra.mxu2 %v1671_v22  ;;  %450 = vmatpush.msra.mxu0 %v1691_v25 }
  0x3b   :  { %508 = vmatpush.msra.mxu3 %v1704_v27  ;;  %469 = vmatpush.msrb.mxu1 %v1684_v24 }
  0x3c   :  { %1314 = vmatmul.msk.f32.gmra.mxu1 %vm50_vm0, %v43_v5  ;;  %489 = vmatpush.msra.mxu2 %v1697_v26  ;;  %v3193_v5 = vld [vmem:[#allocation4_spill] sm:$0xff] }
  0x3d   :  { %1324 = vmatmul.msk.f32.gmra.mxu2 %vm50_vm0, %v1641_v18  ;;  %509 = vmatpush.msra.mxu3 %v1756_v35 }
  0x3e   :  { %1332 = vmatmul.msk.f32.gmra.mxu3 %vm50_vm0, %v1641_v18  ;;  %470 = vmatpush.msrb.mxu1 %v1709_v28 }
  0x3f   :  { %490 = vmatpush.msra.mxu2 %v1721_v30  ;;  %510 = vmatpush.msra.mxu3 %v1782_v39 }
  0x40   :  { %451 = vmatpush.msra.mxu0 %v1714_v29  ;;  %471 = vmatpush.msrb.mxu1 %v1742_v33 }
  0x41   :  { %491 = vmatpush.msra.mxu2 %v1764_v36  ;;  %511 = vmatpush.msra.mxu3 %v1806_v43 }
  0x42   :  { %452 = vmatpush.msra.mxu0 %v1733_v32  ;;  %472 = vmatpush.msrb.mxu1 %v1769_v37 }
  0x43   :  { %492 = vmatpush.msra.mxu2 %v1789_v40  ;;  %512 = vmatpush.msra.mxu3 %v1841_v48 }
  0x44   :  { %1315 = vmatmul.msk.f32.gmra.mxu1 %vm50_vm0, %v1560_v4  ;;  %453 = vmatpush.msra.mxu0 %v1751_v34  ;;  %v3190_v4 = vld [vmem:[#allocation12_spill] sm:$0xff] }
  0x45   :  { %403 = vmatmul.f32.vlgmr.msrb.gmra.mxu2 %v1492_v8  ;;  %473 = vmatpush.msrb.mxu1 %v1794_v41 }
  0x46   :  { %423 = vmatmul.f32.vlgmr.msrb.gmra.mxu3 %v1492_v8  ;;  %493 = vmatpush.msra.mxu2 %v1827_v46 }
  0x47   :  { %513 = vmatpush.msra.mxu3 %v1867_v52  ;;  %454 = vmatpush.msra.mxu0 %v1776_v38 }
  0x48   :  { %474 = vmatpush.msrb.mxu1 %v1854_v50  ;;  %494 = vmatpush.msra.mxu2 %v1849_v49 }
  0x49   :  { %514 = vmatpush.msra.mxu3 %v1890_v56  ;;  %455 = vmatpush.msra.mxu0 %v1799_v42 }
  0x4a   :  { %475 = vmatpush.msrb.mxu1 %v1879_v54  ;;  %495 = vmatpush.msra.mxu2 %v1874_v53 }
  0x4b   :  { %515 = vmatpush.msra.mxu3 %v1918_v60  ;;  %456 = vmatpush.msra.mxu0 %v1818_v45 }
  0x4c   :  { %1316 = vmatmul.msk.f32.gmra.mxu1 %vm50_vm0, %v1641_v18  ;;  %496 = vmatpush.msra.mxu2 %v1910_v59  ;;  %v3191_v18 = vld [vmem:[#allocation25_spill] sm:$0xff] }
  0x4d   :  { %476 = vmatpush.msrb.mxu1 %v1923_v61  ;;  %516 = vmatpush.msra.mxu3 %v1937_v63 }
  0x4e   :  { %457 = vmatpush.msra.mxu0 %v1836_v47  ;;  %497 = vmatpush.msra.mxu2 %v1930_v62 }
  0x4f   :  { %477 = vmatpush.msrb.mxu1 %v1942_v0  ;;  %517 = vmatpush.msra.mxu3 %v1955_v2 }
  0x50   :  { %458 = vmatpush.msra.mxu0 %v1861_v51  ;;  %498 = vmatpush.msra.mxu2 %v1948_v1 }
  0x51   :  { %478 = vmatpush.msrb.mxu1 %v1960_v3  ;;  %518 = vmatpush.msra.mxu3 %v1972_v17 }
  0x52   :  { %459 = vmatpush.msra.mxu0 %v3190_v4  ;;  %499 = vmatpush.msra.mxu2 %v1979_v31  ;;  %v3194_v31 = vld [vmem:[#allocation5_spill] sm:$0xff] }
  0x53   :  { %479 = vmatpush.msrb.mxu1 %v1993_v10  ;;  %519 = vmatpush.msra.mxu3 %v3191_v18 }
  0x54   :  { %383 = vmatmul.f32.vlgmr.msra.gmra.mxu1 %v1492_v8  ;;  %460 = vmatpush.msra.mxu0 %v3192_v57  ;;  %v3195_v8 = vld [vmem:[#allocation24_spill] sm:$0xff] }
  0x55   :  { %480 = vmatpush.msrb.mxu1 %v2012_v55  ;;  %500 = vmatpush.msra.mxu2 %v2000_v58 }
  0x56   :  { %520 = vmatpush.msra.mxu3 %v2007_v44  ;;  %543 = vmatpush.msrb.mxu0 %v3193_v5 }
  0x57   :  { %563 = vmatpush.msra.mxu1 %v1572_v6  ;;  %583 = vmatpush.msrb.mxu2 %v1577_v7 }
  0x58   :  { %603 = vmatpush.msrb.mxu3 %v1607_v12  ;;  %544 = vmatpush.msrb.mxu0 %v3194_v31 }
  0x59   :  { %564 = vmatpush.msra.mxu1 %v1589_v9  ;;  %584 = vmatpush.msrb.mxu2 %v1602_v11 }
  0x5a   :  { %604 = vmatpush.msrb.mxu3 %v1631_v16  ;;  %545 = vmatpush.msrb.mxu0 %v1620_v14 }
  0x5b   :  { %565 = vmatpush.msra.mxu1 %v1614_v13  ;;  %585 = vmatpush.msrb.mxu2 %v1626_v15 }
  0x5c   :  { %605 = vmatpush.msrb.mxu3 %v1679_v23  ;;  %546 = vmatpush.msrb.mxu0 %v1648_v19 }
  0x5d   :  { %566 = vmatpush.msra.mxu1 %v1657_v20  ;;  %586 = vmatpush.msrb.mxu2 %v1671_v22 }
  0x5e   :  { %606 = vmatpush.msrb.mxu3 %v1704_v27  ;;  %547 = vmatpush.msrb.mxu0 %v1666_v21 }
  0x5f   :  { %567 = vmatpush.msra.mxu1 %v1684_v24  ;;  %587 = vmatpush.msrb.mxu2 %v1697_v26 }
  0x60   :  { %607 = vmatpush.msrb.mxu3 %v1756_v35  ;;  %548 = vmatpush.msrb.mxu0 %v1691_v25 }
  0x61   :  { %568 = vmatpush.msra.mxu1 %v1709_v28  ;;  %588 = vmatpush.msrb.mxu2 %v1721_v30 }
  0x62   :  { %608 = vmatpush.msrb.mxu3 %v1782_v39  ;;  %549 = vmatpush.msrb.mxu0 %v1714_v29 }
  0x63   :  { %569 = vmatpush.msra.mxu1 %v1742_v33  ;;  %589 = vmatpush.msrb.mxu2 %v1764_v36 }
  0x64   :  { %609 = vmatpush.msrb.mxu3 %v1806_v43  ;;  %550 = vmatpush.msrb.mxu0 %v1733_v32 }
  0x65   :  { %570 = vmatpush.msra.mxu1 %v1769_v37  ;;  %590 = vmatpush.msrb.mxu2 %v1789_v40 }
  0x66   :  { %610 = vmatpush.msrb.mxu3 %v1841_v48  ;;  %551 = vmatpush.msrb.mxu0 %v1751_v34 }
  0x67   :  { %571 = vmatpush.msra.mxu1 %v1794_v41  ;;  %591 = vmatpush.msrb.mxu2 %v1827_v46 }
  0x68   :  { %611 = vmatpush.msrb.mxu3 %v1867_v52  ;;  %552 = vmatpush.msrb.mxu0 %v1776_v38 }
  0x69   :  { %572 = vmatpush.msra.mxu1 %v1854_v50  ;;  %592 = vmatpush.msrb.mxu2 %v1849_v49 }
  0x6a   :  { %612 = vmatpush.msrb.mxu3 %v1890_v56  ;;  %553 = vmatpush.msrb.mxu0 %v1799_v42 }
  0x6b   :  { %573 = vmatpush.msra.mxu1 %v1879_v54  ;;  %593 = vmatpush.msrb.mxu2 %v1874_v53 }
  0x6c   :  { %613 = vmatpush.msrb.mxu3 %v1918_v60  ;;  %554 = vmatpush.msrb.mxu0 %v1818_v45 }
  0x6d   :  { %574 = vmatpush.msra.mxu1 %v1923_v61  ;;  %594 = vmatpush.msrb.mxu2 %v1910_v59 }
  0x6e   :  { %614 = vmatpush.msrb.mxu3 %v1937_v63  ;;  %555 = vmatpush.msrb.mxu0 %v1836_v47 }
  0x6f   :  { %575 = vmatpush.msra.mxu1 %v1942_v0  ;;  %595 = vmatpush.msrb.mxu2 %v1930_v62 }
  0x70   :  { %615 = vmatpush.msrb.mxu3 %v1955_v2  ;;  %556 = vmatpush.msrb.mxu0 %v1861_v51 }
  0x71   :  { %576 = vmatpush.msra.mxu1 %v1960_v3  ;;  %596 = vmatpush.msrb.mxu2 %v1948_v1 }
  0x72   :  { %616 = vmatpush.msrb.mxu3 %v1972_v17  ;;  %557 = vmatpush.msrb.mxu0 %v3190_v4  ;;  %v239_v17 = vld [vmem:[%s3063_s3] sm:$0xf] }
  0x73   :  { %577 = vmatpush.msra.mxu1 %v1993_v10  ;;  %597 = vmatpush.msrb.mxu2 %v3195_v8  ;;  %v2166_v1 = vperm.slane %v239_v17, 0  ;;  %v243_v51 = vperm.slane %v239_v17, 2  ;;  %v2181_v2 = vperm.slane %v239_v17, 3  ;;  %v242_v59 = vperm.slane %v239_v17, 1 }
  0x74   :  { %617 = vmatpush.msrb.mxu3 %v3191_v18  ;;  %558 = vmatpush.msrb.mxu0 %v3192_v57 }
  0x75   :  { %578 = vmatpush.msra.mxu1 %v2012_v55  ;;  %598 = vmatpush.msrb.mxu2 %v2000_v58 }
  0x76   :  { %618 = vmatpush.msrb.mxu3 %v2007_v44 }
  0x81   :  { %v92_v4 = vpop.f32.mrf.mxu0  ;;  %v110_v10 = vpop.f32.mrf.mxu1 }
  0x82   :  { %v2169_v8 = vadd.f32 %v2166_v1, %v110_v10 }
  0x84   :  { %3196 = vst [vmem:[#allocation4_spill] sm:$0xff] %v2169_v8 }
  0x88   :  { %v2171_v18 = vpop.f32.mrf.mxu2 }
  0x89   :  { %v2173_v57 = vpop.f32.mrf.mxu3  ;;  %v95_v55 = vpop.f32.mrf.mxu0 }
  0x8a   :  { %v2176_v58 = vadd.f32 %v2166_v1, %v95_v55  ;;  %v113_v44 = vpop.f32.mrf.mxu1 }
  0x8b   :  { %v2179_v3 = vadd.f32 %v2166_v1, %v113_v44 }
  0x8c   :  { %3197 = vst [vmem:[#allocation5_spill] sm:$0xff] %v2176_v58 }
  0x8d   :  { %3198 = vst [vmem:[#allocation30_spill] sm:$0xff] %v2179_v3 }
  0x90   :  { %v177_v62 = vpop.f32.mrf.mxu2 }
  0x91   :  { %v2183_v0 = vadd.f32 %v243_v51, %v177_v62  ;;  %v218_v10 = vpop.f32.mrf.mxu3  ;;  %v98_v8 = vpop.f32.mrf.mxu0 }
  0x92   :  { %v2186_v47 = vadd.f32 %v2181_v2, %v218_v10  ;;  %v2189_v63 = vadd.f32 %v2166_v1, %v98_v8  ;;  %v133_v55 = vpop.f32.mrf.mxu1 }
  0x93   :  { %3199 = vst [vmem:[#allocation31_spill] sm:$0xff] %v2183_v0 }
  0x94   :  { %3200 = vst [vmem:[#allocation32_spill] sm:$0xff] %v2186_v47 }
  0x95   :  { %3201 = vst [vmem:[#allocation33_spill] sm:$0xff] %v2189_v63 }
  0x98   :  { %v180_v58 = vpop.f32.mrf.mxu2 }
  0x99   :  { %v2191_v61 = vadd.f32 %v243_v51, %v180_v58  ;;  %v221_v44 = vpop.f32.mrf.mxu3  ;;  %v101_v3 = vpop.f32.mrf.mxu0 }
  0x9a   :  { %v2194_v45 = vadd.f32 %v2181_v2, %v221_v44  ;;  %v2197_v62 = vadd.f32 %v2166_v1, %v101_v3  ;;  %v136_v0 = vpop.f32.mrf.mxu1 }
  0x9b   :  { %3202 = vst [vmem:[#allocation34_spill] sm:$0xff] %v2191_v61  ;;  %v2199_v60 = vadd.f32 %v242_v59, %v136_v0 }
  0x9c   :  { %3203 = vst [vmem:[#allocation35_spill] sm:$0xff] %v2194_v45 }
  0x9d   :  { %3204 = vst [vmem:[#allocation36_spill] sm:$0xff] %v2197_v62 }
  0x9e   :  { %3205 = vst [vmem:[#allocation37_spill] sm:$0xff] %v2199_v60 }
  0xa0   :  { %v183_v10 = vpop.f32.mrf.mxu2 }
  0xa1   :  { %v2201_v47 = vadd.f32 %v243_v51, %v183_v10  ;;  %v224_v8 = vpop.f32.mrf.mxu3  ;;  %v104_v63 = vpop.f32.mrf.mxu0 }
  0xa2   :  { %v2204_v17 = vadd.f32 %v2181_v2, %v224_v8  ;;  %v2207_v58 = vadd.f32 %v2166_v1, %v104_v63  ;;  %v139_v61 = vpop.f32.mrf.mxu1 }
  0xa3   :  { %3206 = vst [vmem:[#allocation38_spill] sm:$0xff] %v2201_v47  ;;  %v2209_v44 = vadd.f32 %v242_v59, %v139_v61 }
  0xa4   :  { %3207 = vst [vmem:[#allocation39_spill] sm:$0xff] %v2204_v17 }
  0xa5   :  { %3208 = vst [vmem:[#allocation40_spill] sm:$0xff] %v2207_v58 }
  0xa6   :  { %3209 = vst [vmem:[#allocation41_spill] sm:$0xff] %v2209_v44 }
  0xa8   :  { %v186_v45 = vpop.f32.mrf.mxu2 }
  0xa9   :  { %v2211_v3 = vadd.f32 %v243_v51, %v186_v45  ;;  %v227_v62 = vpop.f32.mrf.mxu3  ;;  %v107_v0 = vpop.f32.mrf.mxu0 }
  0xaa   :  { %v2214_v60 = vadd.f32 %v2181_v2, %v227_v62  ;;  %v2217_v10 = vadd.f32 %v2166_v1, %v107_v0  ;;  %v142_v47 = vpop.f32.mrf.mxu1 }
  0xab   :  { %3210 = vst [vmem:[#allocation42_spill] sm:$0xff] %v2211_v3  ;;  %v2219_v8 = vadd.f32 %v242_v59, %v142_v47 }
  0xac   :  { %3211 = vst [vmem:[#allocation43_spill] sm:$0xff] %v2214_v60 }
  0xad   :  { %3212 = vst [vmem:[#allocation44_spill] sm:$0xff] %v2217_v10 }
  0xae   :  { %3213 = vst [vmem:[#allocation45_spill] sm:$0xff] %v2219_v8 }
  0xb0   :  { %v189_v17 = vpop.f32.mrf.mxu2 }
  0xb1   :  { %v2221_v63 = vadd.f32 %v243_v51, %v189_v17  ;;  %v230_v58 = vpop.f32.mrf.mxu3 }
  0xb2   :  { %v2224_v61 = vadd.f32 %v2181_v2, %v230_v58  ;;  %v145_v45 = vpop.f32.mrf.mxu1 }
  0xb3   :  { %3214 = vst [vmem:[#allocation46_spill] sm:$0xff] %v2221_v63  ;;  %v2226_v3 = vadd.f32 %v242_v59, %v145_v45 }
  0xb4   :  { %3215 = vst [vmem:[#allocation47_spill] sm:$0xff] %v2224_v61 }
  0xb5   :  { %3216 = vst [vmem:[#allocation48_spill] sm:$0xff] %v2226_v3  ;;  %v364_v3 = vpop.f32.mrf.mxu0 }
  0xb8   :  { %v192_v44 = vpop.f32.mrf.mxu2 }
  0xb9   :  { %v2228_v53 = vadd.f32 %v243_v51, %v192_v44  ;;  %v233_v62 = vpop.f32.mrf.mxu3  ;;  %v249_v44 = vadd.f32 %v2166_v1, %v92_v4 }
  0xba   :  { %v2231_v0 = vadd.f32 %v2181_v2, %v233_v62  ;;  %v148_v10 = vpop.f32.mrf.mxu1 }
  0xbb   :  { %3217 = vst [vmem:[#allocation49_spill] sm:$0xff] %v2228_v53  ;;  %v2233_v47 = vadd.f32 %v242_v59, %v148_v10  ;;  %v365_v8 = vadd.f32 %v364_v3, %v249_v44  ;;  %v250_v10 = vadd.f32 %v242_v59, %v133_v55 }
  0xbc   :  { %3218 = vst [vmem:[#allocation50_spill] sm:$0xff] %v2231_v0 }
  0xbd   :  { %3219 = vst [vmem:[#allocation51_spill] sm:$0xff] %v2233_v47  ;;  %v427_v0 = vmul.f32 0.5, %v365_v8 }
  0xbf   :  { %1339 = vtanh.f32 %v427_v0 }
  0xc0   :  { %v195_v60 = vpop.f32.mrf.mxu2 }
  0xc1   :  { %v2235_v17 = vadd.f32 %v243_v51, %v195_v60  ;;  %v236_v63 = vpop.f32.mrf.mxu3  ;;  %v251_v60 = vadd.f32 %v243_v51, %v2171_v18 }
  0xc2   :  { %v2238_v58 = vadd.f32 %v2181_v2, %v236_v63  ;;  %v151_v61 = vpop.f32.mrf.mxu1 }
  0xc3   :  { %3220 = vst [vmem:[#allocation52_spill] sm:$0xff] %v2235_v17  ;;  %v2240_v45 = vadd.f32 %v242_v59, %v151_v61  ;;  %v252_v61 = vadd.f32 %v2181_v2, %v2173_v57 }
  0xc4   :  { %3221 = vst [vmem:[#allocation53_spill] sm:$0xff] %v2238_v58 }
  0xc5   :  { %3222 = vst [vmem:[#allocation54_spill] sm:$0xff] %v2240_v45  ;;  %v1340_v1 = vpop.eup %1339 }
  0xc6   :  { %v429_v4 = vmul.f32 0.5, %v1340_v1  ;;  %v3231_v1 = vld [vmem:[#allocation18_spill] sm:$0xff] }
  0xc8   :  { %v404_v47 = vpop.f32.mrf.mxu2  ;;  %v430_v8 = vadd.f32 0.5, %v429_v4  ;;  %v3233_v4 = vld [vmem:[#allocation19_spill] sm:$0xff] }
  0xc9   :  { %v424_v17 = vpop.f32.mrf.mxu3  ;;  %v405_v58 = vadd.f32 %v404_v47, %v251_v60  ;;  %v3228_v60 = vld [vmem:[#allocation7_spill] sm:$0xff] }
  0xca   :  { %v154_v53 = vpop.f32.mrf.mxu1  ;;  %v425_v42 = vadd.f32 %v424_v17, %v252_v61  ;;  %v3230_v61 = vld [vmem:[#allocation14_spill] sm:$0xff] }
  0xcb   :  { %v2243_v62 = vadd.f32 %v242_v59, %v154_v53 }
  0xcc   :  { %v436_v53 = vmul.f32 0.5, %v425_v42  ;;  %v3224_v42 = vld [vmem:[#allocation6_spill] sm:$0xff] }
  0xcd   :  { %3223 = vst [vmem:[#allocation55_spill] sm:$0xff] %v2243_v62  ;;  %v3246_v62 = vld [vmem:[#allocation27_spill] sm:$0xff] }
  0xd2   :  { %v384_v54 = vpop.f32.mrf.mxu1 }
  0xd3   :  { %v385_v63 = vadd.f32 %v384_v54, %v250_v10  ;;  %v3227_v10 = vld [vmem:[#allocation15_spill] sm:$0xff] }
  0xd5   :  { %v431_v45 = vmul.f32 0.5, %v385_v63  ;;  %v3229_v63 = vld [vmem:[#allocation16_spill] sm:$0xff] }
  0xd7   :  { %1341 = vtanh.f32 %v431_v45  ;;  %v3226_v45 = vld [vmem:[#allocation10_spill] sm:$0xff] }
  0xd8   :  { %1343 = vtanh.f32 %v405_v58  ;;  %v3225_v58 = vld [vmem:[#allocation11_spill] sm:$0xff] }
  0xd9   :  { %1345 = vtanh.f32 %v436_v53  ;;  %v3232_v53 = vld [vmem:[#allocation8_spill] sm:$0xff] }
  0xdd   :  { %v1342_v3 = vpop.eup %1341 }
  0xde   :  { %v433_v59 = vmul.f32 0.5, %v1342_v3  ;;  %v1344_v55 = vpop.eup %1343  ;;  %v3234_v3 = vld [vmem:[#allocation17_spill] sm:$0xff] }
  0xdf   :  { %v441_v18 = vmul.f32 %v1344_v55, %v430_v8  ;;  %v1346_v54 = vpop.eup %1345  ;;  %v3236_v55 = vld [vmem:[#allocation9_spill] sm:$0xff]  ;;  %v3237_v8 = vld [vmem:[#allocation22_spill] sm:$0xff] }
  0xe0   :  { %v434_v51 = vadd.f32 0.5, %v433_v59  ;;  %v438_v2 = vmul.f32 0.5, %v1346_v54  ;;  %v3235_v59 = vld [vmem:[#allocation21_spill] sm:$0xff]  ;;  %v3241_v54 = vld [vmem:[#allocation26_spill] sm:$0xff] }
  0xe2   :  { %v440_v0 = vmul.f32 0.0, %v434_v51  ;;  %v439_v57 = vadd.f32 0.5, %v438_v2  ;;  %v3238_v51 = vld [vmem:[#allocation20_spill] sm:$0xff] }
  0xe3   :  { %v3242_v2 = vld [vmem:[#allocation24_spill] sm:$0xff] }
  0xe4   :  { %v2248_v44 = vadd.f32 %v441_v18, %v440_v0  ;;  %v3239_v18 = vld [vmem:[#allocation23_spill] sm:$0xff]  ;;  %v3240_v0 = vld [vmem:[#allocation12_spill] sm:$0xff] }
  0xe6   :  { %1347 = vtanh.f32 %v2248_v44 }
  0xec   :  { %v1348_v47 = vpop.eup %1347 }
  0xed   :  { %v444_v17 = vmul.f32 %v1348_v47, %v439_v57  ;;  %v3243_v57 = vld [vmem:[#allocation25_spill] sm:$0xff] }
  0xee   :  { %v3244_v47 = vld [vmem:[#allocation13_spill] sm:$0xff] }
  0xef   :  { %461 = vmatmul.f32.vlgmr.msra.gmra.mxu0 %v444_v17  ;;  %481 = vmatmul.f32.vlgmr.msrb.gmra.mxu1 %v444_v17 }
  0xf0   :  { %501 = vmatmul.f32.vlgmr.msra.gmra.mxu2 %v444_v17  ;;  %521 = vmatmul.f32.vlgmr.msra.gmra.mxu3 %v444_v17  ;;  %v3245_v17 = vld [vmem:[#allocation29_spill] sm:$0xff] }
  0xf1   :  { %641 = vmatpush.msra.mxu0 %v3193_v5  ;;  %661 = vmatpush.msrb.mxu1 %v1572_v6 }
  0xf2   :  { %681 = vmatpush.msra.mxu2 %v1577_v7  ;;  %701 = vmatpush.msra.mxu3 %v1607_v12 }
  0xf3   :  { %642 = vmatpush.msra.mxu0 %v3194_v31  ;;  %662 = vmatpush.msrb.mxu1 %v1589_v9 }
  0xf4   :  { %682 = vmatpush.msra.mxu2 %v1602_v11  ;;  %702 = vmatpush.msra.mxu3 %v1631_v16 }
  0xf5   :  { %643 = vmatpush.msra.mxu0 %v1620_v14  ;;  %663 = vmatpush.msrb.mxu1 %v1614_v13 }
  0xf6   :  { %683 = vmatpush.msra.mxu2 %v1626_v15  ;;  %703 = vmatpush.msra.mxu3 %v1679_v23 }
  0xf7   :  { %644 = vmatpush.msra.mxu0 %v1648_v19  ;;  %664 = vmatpush.msrb.mxu1 %v1657_v20 }
  0xf8   :  { %684 = vmatpush.msra.mxu2 %v1671_v22  ;;  %704 = vmatpush.msra.mxu3 %v1704_v27 }
  0xf9   :  { %645 = vmatpush.msra.mxu0 %v1666_v21  ;;  %665 = vmatpush.msrb.mxu1 %v1684_v24 }
  0xfa   :  { %685 = vmatpush.msra.mxu2 %v1697_v26  ;;  %705 = vmatpush.msra.mxu3 %v1756_v35 }
  0xfb   :  { %646 = vmatpush.msra.mxu0 %v1691_v25  ;;  %666 = vmatpush.msrb.mxu1 %v1709_v28 }
  0xfc   :  { %686 = vmatpush.msra.mxu2 %v1721_v30  ;;  %706 = vmatpush.msra.mxu3 %v1782_v39 }
  0xfd   :  { %647 = vmatpush.msra.mxu0 %v1714_v29  ;;  %667 = vmatpush.msrb.mxu1 %v1742_v33 }
  0xfe   :  { %687 = vmatpush.msra.mxu2 %v1764_v36  ;;  %707 = vmatpush.msra.mxu3 %v1806_v43 }
  0xff   :  { %648 = vmatpush.msra.mxu0 %v1733_v32  ;;  %668 = vmatpush.msrb.mxu1 %v1769_v37 }
 0x100   :  { %688 = vmatpush.msra.mxu2 %v1789_v40  ;;  %708 = vmatpush.msra.mxu3 %v1841_v48 }
 0x101   :  { %649 = vmatpush.msra.mxu0 %v1751_v34  ;;  %669 = vmatpush.msrb.mxu1 %v1794_v41 }
 0x102   :  { %689 = vmatpush.msra.mxu2 %v1827_v46  ;;  %709 = vmatpush.msra.mxu3 %v1867_v52 }
 0x103   :  { %650 = vmatpush.msra.mxu0 %v1776_v38  ;;  %670 = vmatpush.msrb.mxu1 %v1854_v50 }
 0x104   :  { %690 = vmatpush.msra.mxu2 %v1849_v49  ;;  %710 = vmatpush.msra.mxu3 %v1890_v56 }
 0x105   :  { %651 = vmatpush.msra.mxu0 %v3224_v42  ;;  %671 = vmatpush.msrb.mxu1 %v3225_v58 }
 0x106   :  { %691 = vmatpush.msra.mxu2 %v3226_v45  ;;  %711 = vmatpush.msra.mxu3 %v3227_v10 }
 0x107   :  { %652 = vmatpush.msra.mxu0 %v3228_v60  ;;  %672 = vmatpush.msrb.mxu1 %v3229_v63 }
 0x108   :  { %692 = vmatpush.msra.mxu2 %v3230_v61  ;;  %712 = vmatpush.msra.mxu3 %v3231_v1  ;;  %v3251_v1 = vld [vmem:[#allocation32_spill] sm:$0xff] }
 0x109   :  { %653 = vmatpush.msra.mxu0 %v3232_v53  ;;  %673 = vmatpush.msrb.mxu1 %v3233_v4  ;;  %v3250_v53 = vld [vmem:[#allocation31_spill] sm:$0xff] }
 0x10a   :  { %693 = vmatpush.msra.mxu2 %v3234_v3  ;;  %713 = vmatpush.msra.mxu3 %v3235_v59  ;;  %v3248_v59 = vld [vmem:[#allocation5_spill] sm:$0xff] }
 0x10b   :  { %654 = vmatpush.msra.mxu0 %v3236_v55  ;;  %674 = vmatpush.msrb.mxu1 %v3237_v8  ;;  %v3247_v55 = vld [vmem:[#allocation28_spill] sm:$0xff]  ;;  %v3249_v3 = vld [vmem:[#allocation37_spill] sm:$0xff] }
 0x10c   :  { %694 = vmatpush.msra.mxu2 %v3238_v51  ;;  %714 = vmatpush.msra.mxu3 %v3239_v18 }
 0x10d   :  { %655 = vmatpush.msra.mxu0 %v3240_v0  ;;  %675 = vmatpush.msrb.mxu1 %v3241_v54 }
 0x10e   :  { %695 = vmatpush.msra.mxu2 %v3242_v2  ;;  %715 = vmatpush.msra.mxu3 %v3243_v57 }
 0x10f   :  { %656 = vmatpush.msra.mxu0 %v3244_v47  ;;  %676 = vmatpush.msrb.mxu1 %v3245_v17 }
 0x110   :  { %696 = vmatpush.msra.mxu2 %v3246_v62  ;;  %716 = vmatpush.msra.mxu3 %v3247_v55 }
 0x16c   :  { %v462_v8 = vpop.f32.mrf.mxu0  ;;  %v482_v51 = vpop.f32.mrf.mxu1 }
 0x16d   :  { %v463_v18 = vadd.f32 %v462_v8, %v3248_v59  ;;  %v483_v0 = vadd.f32 %v482_v51, %v3249_v3 }
 0x16f   :  { %v525_v4 = vmul.f32 0.5, %v463_v18  ;;  %v529_v54 = vmul.f32 0.5, %v483_v0 }
 0x171   :  { %1349 = vtanh.f32 %v525_v4 }
 0x172   :  { %1351 = vtanh.f32 %v529_v54 }
 0x173   :  { %v502_v2 = vpop.f32.mrf.mxu2  ;;  %v522_v57 = vpop.f32.mrf.mxu3 }
 0x174   :  { %v503_v47 = vadd.f32 %v502_v2, %v3250_v53  ;;  %v523_v17 = vadd.f32 %v522_v57, %v3251_v1  ;;  %v2398_v57 = vld [vmem:[%s3062_s2 + $0x1e0] sm:$0xff] }
 0x176   :  { %1353 = vtanh.f32 %v503_v47  ;;  %v534_v62 = vmul.f32 0.5, %v523_v17  ;;  %v2404_v47 = vld [vmem:[%s3062_s2 + $0x1e8] sm:$0xff]  ;;  %v2410_v17 = vld [vmem:[%s3062_s2 + $0x1f0] sm:$0xff] }
 0x177   :  { %v1350_v61 = vpop.eup %1349 }
 0x178   :  { %v1352_v55 = vpop.eup %1351  ;;  %v527_v63 = vmul.f32 0.5, %v1350_v61  ;;  %1355 = vtanh.f32 %v534_v62 }
 0x179   :  { %v531_v60 = vmul.f32 0.5, %v1352_v55 }
 0x17a   :  { %v528_v59 = vadd.f32 0.5, %v527_v63 }
 0x17b   :  { %v532_v8 = vadd.f32 0.5, %v531_v60 }
 0x17c   :  { %v1354_v3 = vpop.eup %1353 }
 0x17d   :  { %v538_v51 = vmul.f32 %v532_v8, %v2248_v44  ;;  %v539_v4 = vmul.f32 %v1354_v3, %v528_v59  ;;  %v2416_v59 = vld [vmem:[%s3062_s2 + $0x1f8] sm:$0xff]  ;;  %v2422_v8 = vld [vmem:[%s3062_s2 + $0x1c0] sm:$0xff]  ;;  %v2428_v3 = vld [vmem:[%s3062_s2 + $0x1c8] sm:$0xff] }
 0x17e   :  { %v1356_v18 = vpop.eup %1355 }
 0x17f   :  { %v2320_v0 = vadd.f32 %v539_v4, %v538_v51  ;;  %v536_v53 = vmul.f32 0.5, %v1356_v18  ;;  %v2434_v51 = vld [vmem:[%s3062_s2 + $0x1d0] sm:$0xff]  ;;  %v2440_v4 = vld [vmem:[%s3062_s2 + $0x1d8] sm:$0xff]  ;;  %v2446_v18 = vld [vmem:[%s3062_s2 + $0x1a0] sm:$0xff] }
 0x181   :  { %1357 = vtanh.f32 %v2320_v0  ;;  %v537_v1 = vadd.f32 0.5, %v536_v53  ;;  %v2458_v53 = vld [vmem:[%s3062_s2 + $0x1b0] sm:$0xff] }
 0x187   :  { %v1358_v54 = vpop.eup %1357 }
 0x188   :  { %v542_v2 = vmul.f32 %v1358_v54, %v537_v1  ;;  %v2464_v1 = vld [vmem:[%s3062_s2 + $0x1b8] sm:$0xff]  ;;  %v2470_v54 = vld [vmem:[%s3062_s2 + $0x180] sm:$0xff] }
 0x18a   :  { %559 = vmatmul.f32.vlgmr.msrb.gmra.mxu0 %v542_v2  ;;  %579 = vmatmul.f32.vlgmr.msra.gmra.mxu1 %v542_v2 }
 0x18b   :  { %599 = vmatmul.f32.vlgmr.msrb.gmra.mxu2 %v542_v2  ;;  %619 = vmatmul.f32.vlgmr.msrb.gmra.mxu3 %v542_v2  ;;  %v2476_v2 = vld [vmem:[%s3062_s2 + $0x188] sm:$0xff] }
 0x18c   :  { %739 = vmatpush.msrb.mxu0 %v3193_v5  ;;  %759 = vmatpush.msra.mxu1 %v1572_v6  ;;  %v3252_v6 = vld [vmem:[#allocation7_spill] sm:$0xff] }
 0x18d   :  { %779 = vmatpush.msrb.mxu2 %v1577_v7  ;;  %799 = vmatpush.msrb.mxu3 %v1607_v12  ;;  %v3253_v7 = vld [vmem:[#allocation16_spill] sm:$0xff] }
 0x18e   :  { %740 = vmatpush.msrb.mxu0 %v3194_v31  ;;  %760 = vmatpush.msra.mxu1 %v1589_v9  ;;  %v3254_v9 = vld [vmem:[#allocation14_spill] sm:$0xff]  ;;  %v3256_v12 = vld [vmem:[#allocation8_spill] sm:$0xff] }
 0x18f   :  { %780 = vmatpush.msrb.mxu2 %v1602_v11  ;;  %800 = vmatpush.msrb.mxu3 %v1631_v16  ;;  %v3255_v11 = vld [vmem:[#allocation18_spill] sm:$0xff]  ;;  %v3260_v16 = vld [vmem:[#allocation9_spill] sm:$0xff] }
 0x190   :  { %741 = vmatpush.msrb.mxu0 %v1620_v14  ;;  %761 = vmatpush.msra.mxu1 %v1614_v13  ;;  %v3257_v13 = vld [vmem:[#allocation19_spill] sm:$0xff]  ;;  %v3258_v14 = vld [vmem:[#allocation17_spill] sm:$0xff] }
 0x191   :  { %781 = vmatpush.msrb.mxu2 %v1626_v15  ;;  %801 = vmatpush.msrb.mxu3 %v1679_v23  ;;  %v3259_v15 = vld [vmem:[#allocation21_spill] sm:$0xff]  ;;  %v3265_v23 = vld [vmem:[#allocation26_spill] sm:$0xff] }
 0x192   :  { %742 = vmatpush.msrb.mxu0 %v1648_v19  ;;  %762 = vmatpush.msra.mxu1 %v1657_v20  ;;  %v3261_v19 = vld [vmem:[#allocation22_spill] sm:$0xff]  ;;  %v3262_v20 = vld [vmem:[#allocation20_spill] sm:$0xff] }
 0x193   :  { %782 = vmatpush.msrb.mxu2 %v1671_v22  ;;  %802 = vmatpush.msrb.mxu3 %v1704_v27  ;;  %v3264_v22 = vld [vmem:[#allocation12_spill] sm:$0xff]  ;;  %v3269_v27 = vld [vmem:[#allocation29_spill] sm:$0xff] }
 0x194   :  { %743 = vmatpush.msrb.mxu0 %v1666_v21  ;;  %763 = vmatpush.msra.mxu1 %v1684_v24  ;;  %v3263_v21 = vld [vmem:[#allocation23_spill] sm:$0xff]  ;;  %v3266_v24 = vld [vmem:[#allocation24_spill] sm:$0xff] }
 0x195   :  { %783 = vmatpush.msrb.mxu2 %v1697_v26  ;;  %803 = vmatpush.msrb.mxu3 %v1756_v35  ;;  %v3268_v26 = vld [vmem:[#allocation13_spill] sm:$0xff] }
 0x196   :  { %744 = vmatpush.msrb.mxu0 %v1691_v25  ;;  %764 = vmatpush.msra.mxu1 %v1709_v28  ;;  %v3267_v25 = vld [vmem:[#allocation25_spill] sm:$0xff]  ;;  %v3270_v28 = vld [vmem:[#allocation27_spill] sm:$0xff] }
 0x197   :  { %784 = vmatpush.msrb.mxu2 %v1721_v30  ;;  %804 = vmatpush.msrb.mxu3 %v1782_v39  ;;  %v3273_v35 = vld [vmem:[#allocation41_spill] sm:$0xff] }
 0x198   :  { %745 = vmatpush.msrb.mxu0 %v1714_v29  ;;  %765 = vmatpush.msra.mxu1 %v1742_v33  ;;  %v3271_v29 = vld [vmem:[#allocation28_spill] sm:$0xff]  ;;  %v3272_v33 = vld [vmem:[#allocation33_spill] sm:$0xff] }
 0x199   :  { %785 = vmatpush.msrb.mxu2 %v1764_v36  ;;  %805 = vmatpush.msrb.mxu3 %v1806_v43 }
 0x19a   :  { %746 = vmatpush.msrb.mxu0 %v1733_v32  ;;  %766 = vmatpush.msra.mxu1 %v1769_v37 }
 0x19b   :  { %786 = vmatpush.msrb.mxu2 %v1789_v40  ;;  %806 = vmatpush.msrb.mxu3 %v1841_v48 }
 0x19c   :  { %747 = vmatpush.msrb.mxu0 %v1751_v34  ;;  %767 = vmatpush.msra.mxu1 %v1794_v41  ;;  %v3274_v41 = vld [vmem:[#allocation34_spill] sm:$0xff] }
 0x19d   :  { %787 = vmatpush.msrb.mxu2 %v1827_v46  ;;  %807 = vmatpush.msrb.mxu3 %v1867_v52  ;;  %v3275_v46 = vld [vmem:[#allocation35_spill] sm:$0xff] }
 0x19e   :  { %748 = vmatpush.msrb.mxu0 %v1776_v38  ;;  %768 = vmatpush.msra.mxu1 %v1854_v50 }
 0x19f   :  { %788 = vmatpush.msrb.mxu2 %v1849_v49  ;;  %808 = vmatpush.msrb.mxu3 %v1890_v56 }
 0x1a0   :  { %749 = vmatpush.msrb.mxu0 %v3224_v42  ;;  %769 = vmatpush.msra.mxu1 %v3225_v58 }
 0x1a1   :  { %789 = vmatpush.msrb.mxu2 %v3226_v45  ;;  %809 = vmatpush.msrb.mxu3 %v3227_v10 }
 0x1a2   :  { %750 = vmatpush.msrb.mxu0 %v3252_v6  ;;  %770 = vmatpush.msra.mxu1 %v3253_v7  ;;  %v2482_v6 = vld [vmem:[%s3062_s2 + $0x190] sm:$0xff]  ;;  %v2488_v7 = vld [vmem:[%s3062_s2 + $0x198] sm:$0xff] }
 0x1a3   :  { %790 = vmatpush.msrb.mxu2 %v3254_v9  ;;  %810 = vmatpush.msrb.mxu3 %v3255_v11  ;;  %v2494_v9 = vld [vmem:[%s3062_s2 + $0x160] sm:$0xff]  ;;  %v2500_v11 = vld [vmem:[%s3062_s2 + $0x168] sm:$0xff] }
 0x1a4   :  { %751 = vmatpush.msrb.mxu0 %v3256_v12  ;;  %771 = vmatpush.msra.mxu1 %v3257_v13  ;;  %v2506_v12 = vld [vmem:[%s3062_s2 + $0x170] sm:$0xff]  ;;  %v2512_v13 = vld [vmem:[%s3062_s2 + $0x178] sm:$0xff] }
 0x1a5   :  { %791 = vmatpush.msrb.mxu2 %v3258_v14  ;;  %811 = vmatpush.msrb.mxu3 %v3259_v15  ;;  %v2518_v14 = vld [vmem:[%s3062_s2 + $0x140] sm:$0xff]  ;;  %v2524_v15 = vld [vmem:[%s3062_s2 + $0x148] sm:$0xff] }
 0x1a6   :  { %752 = vmatpush.msrb.mxu0 %v3260_v16  ;;  %772 = vmatpush.msra.mxu1 %v3261_v19  ;;  %v2530_v16 = vld [vmem:[%s3062_s2 + $0x150] sm:$0xff]  ;;  %v2536_v19 = vld [vmem:[%s3062_s2 + $0x158] sm:$0xff] }
 0x1a7   :  { %792 = vmatpush.msrb.mxu2 %v3262_v20  ;;  %812 = vmatpush.msrb.mxu3 %v3263_v21  ;;  %v2542_v20 = vld [vmem:[%s3062_s2 + $0x120] sm:$0xff]  ;;  %v2548_v21 = vld [vmem:[%s3062_s2 + $0x128] sm:$0xff] }
 0x1a8   :  { %753 = vmatpush.msrb.mxu0 %v3264_v22  ;;  %773 = vmatpush.msra.mxu1 %v3265_v23  ;;  %v2554_v22 = vld [vmem:[%s3062_s2 + $0x130] sm:$0xff]  ;;  %v2560_v23 = vld [vmem:[%s3062_s2 + $0x138] sm:$0xff] }
 0x1a9   :  { %793 = vmatpush.msrb.mxu2 %v3266_v24  ;;  %813 = vmatpush.msrb.mxu3 %v3267_v25  ;;  %v2566_v24 = vld [vmem:[%s3062_s2 + $0x100] sm:$0xff]  ;;  %v2572_v25 = vld [vmem:[%s3062_s2 + $0x108] sm:$0xff] }
 0x1aa   :  { %754 = vmatpush.msrb.mxu0 %v3268_v26  ;;  %774 = vmatpush.msra.mxu1 %v3269_v27  ;;  %v2578_v26 = vld [vmem:[%s3062_s2 + $0x110] sm:$0xff] }
 0x1ab   :  { %794 = vmatpush.msrb.mxu2 %v3270_v28  ;;  %814 = vmatpush.msrb.mxu3 %v3271_v29  ;;  %v2584_v28 = vld [vmem:[%s3062_s2 + $0x118] sm:$0xff]  ;;  %v2590_v29 = vld [vmem:[%s3062_s2 + $0xe0] sm:$0xff] }
 0x207   :  { %v560_v30 = vpop.f32.mrf.mxu0  ;;  %v580_v32 = vpop.f32.mrf.mxu1 }
 0x208   :  { %v561_v34 = vadd.f32 %v560_v30, %v3272_v33  ;;  %v581_v36 = vadd.f32 %v580_v32, %v3273_v35  ;;  %v2596_v30 = vld [vmem:[%s3062_s2 + $0xe8] sm:$0xff]  ;;  %v2602_v32 = vld [vmem:[%s3062_s2 + $0xf0] sm:$0xff]  ;;  %v2608_v33 = vld [vmem:[%s3062_s2 + $0xf8] sm:$0xff] }
 0x209   :  { %v2620_v35 = vld [vmem:[%s3062_s2 + $0xc8] sm:$0xff] }
 0x20a   :  { %v623_v37 = vmul.f32 0.5, %v561_v34  ;;  %v627_v38 = vmul.f32 0.5, %v581_v36  ;;  %v2614_v34 = vld [vmem:[%s3062_s2 + $0xc0] sm:$0xff]  ;;  %v2626_v36 = vld [vmem:[%s3062_s2 + $0xd0] sm:$0xff] }
 0x20c   :  { %1359 = vtanh.f32 %v623_v37  ;;  %v2632_v37 = vld [vmem:[%s3062_s2 + $0xd8] sm:$0xff] }
 0x20d   :  { %1361 = vtanh.f32 %v627_v38  ;;  %v2638_v38 = vld [vmem:[%s3062_s2 + $0xa0] sm:$0xff] }
 0x20e   :  { %v600_v39 = vpop.f32.mrf.mxu2  ;;  %v620_v40 = vpop.f32.mrf.mxu3 }
 0x20f   :  { %v601_v43 = vadd.f32 %v600_v39, %v3274_v41  ;;  %v621_v48 = vadd.f32 %v620_v40, %v3275_v46  ;;  %v2644_v39 = vld [vmem:[%s3062_s2 + $0xa8] sm:$0xff]  ;;  %v2650_v40 = vld [vmem:[%s3062_s2 + $0xb0] sm:$0xff]  ;;  %v2656_v41 = vld [vmem:[%s3062_s2 + $0xb8] sm:$0xff] }
 0x210   :  { %v2668_v46 = vld [vmem:[%s3062_s2 + $0x88] sm:$0xff] }
 0x211   :  { %1363 = vtanh.f32 %v601_v43  ;;  %v632_v49 = vmul.f32 0.5, %v621_v48  ;;  %v2662_v43 = vld [vmem:[%s3062_s2 + $0x80] sm:$0xff]  ;;  %3277 = vst [vmem:[#allocation11_spill] sm:$0xff] %v2668_v46  ;;  %v2674_v48 = vld [vmem:[%s3062_s2 + $0x90] sm:$0xff] }
 0x212   :  { %v1360_v50 = vpop.eup %1359  ;;  %3276 = vst [vmem:[#allocation6_spill] sm:$0xff] %v2662_v43 }
 0x213   :  { %v1362_v52 = vpop.eup %1361  ;;  %v625_v56 = vmul.f32 0.5, %v1360_v50  ;;  %1365 = vtanh.f32 %v632_v49  ;;  %3278 = vst [vmem:[#allocation10_spill] sm:$0xff] %v2674_v48  ;;  %v2680_v49 = vld [vmem:[%s3062_s2 + $0x98] sm:$0xff]  ;;  %v2686_v50 = vld [vmem:[%s3062_s2 + $0x60] sm:$0xff] }
 0x214   :  { %v629_v31 = vmul.f32 0.5, %v1362_v52  ;;  %3279 = vst [vmem:[#allocation15_spill] sm:$0xff] %v2680_v49  ;;  %v2692_v52 = vld [vmem:[%s3062_s2 + $0x68] sm:$0xff] }
 0x215   :  { %v626_v5 = vadd.f32 0.5, %v625_v56  ;;  %3280 = vst [vmem:[#allocation5_spill] sm:$0xff] %v2686_v50  ;;  %v2698_v56 = vld [vmem:[%s3062_s2 + $0x70] sm:$0xff] }
 0x216   :  { %v630_v62 = vadd.f32 0.5, %v629_v31  ;;  %3281 = vst [vmem:[#allocation37_spill] sm:$0xff] %v2692_v52  ;;  %v2704_v31 = vld [vmem:[%s3062_s2 + $0x78] sm:$0xff] }
 0x217   :  { %v1364_v44 = vpop.eup %1363  ;;  %3282 = vst [vmem:[#allocation31_spill] sm:$0xff] %v2698_v56 }
 0x218   :  { %v636_v42 = vmul.f32 %v630_v62, %v2320_v0  ;;  %v637_v58 = vmul.f32 %v1364_v44, %v626_v5  ;;  %v2452_v0 = vld [vmem:[%s3062_s2 + $0x1a8] sm:$0xff]  ;;  %3283 = vst [vmem:[#allocation32_spill] sm:$0xff] %v2704_v31  ;;  %v2710_v5 = vld [vmem:[%s3062_s2 + $0x40] sm:$0xff]  ;;  %v2722_v44 = vld [vmem:[%s3062_s2 + $0x50] sm:$0xff] }
 0x219   :  { %v1366_v45 = vpop.eup %1365  ;;  %3284 = vst [vmem:[#allocation7_spill] sm:$0xff] %v2710_v5  ;;  %v2716_v62 = vld [vmem:[%s3062_s2 + $0x48] sm:$0xff] }
 0x21a   :  { %v2392_v10 = vadd.f32 %v637_v58, %v636_v42  ;;  %v634_v60 = vmul.f32 0.5, %v1366_v45  ;;  %3285 = vst [vmem:[#allocation16_spill] sm:$0xff] %v2716_v62  ;;  %v2728_v42 = vld [vmem:[%s3062_s2 + $0x58] sm:$0xff]  ;;  %v2734_v58 = vld [vmem:[%s3062_s2 + $0x20] sm:$0xff]  ;;  %v2740_v45 = vld [vmem:[%s3062_s2 + $0x28] sm:$0xff] }
 0x21b   :  { %3286 = vst [vmem:[#allocation14_spill] sm:$0xff] %v2722_v44 }
 0x21c   :  { %1367 = vtanh.f32 %v2392_v10  ;;  %v635_v63 = vadd.f32 0.5, %v634_v60  ;;  %3287 = vst [vmem:[#allocation18_spill] sm:$0xff] %v2728_v42  ;;  %v2746_v60 = vld [vmem:[%s3062_s2 + $0x30] sm:$0xff] }
 0x21d   :  { %3288 = vst [vmem:[#allocation8_spill] sm:$0xff] %v2734_v58 }
 0x21e   :  { %3289 = vst [vmem:[#allocation19_spill] sm:$0xff] %v2740_v45 }
 0x21f   :  { %3290 = vst [vmem:[#allocation17_spill] sm:$0xff] %v2746_v60 }
 0x222   :  { %v1368_v61 = vpop.eup %1367 }
 0x223   :  { %v640_v55 = vmul.f32 %v1368_v61, %v635_v63  ;;  %v2752_v63 = vld [vmem:[%s3062_s2 + $0x38] sm:$0xff]  ;;  %v2758_v61 = vld [vmem:[%s3062_s2] sm:$0xff] }
 0x224   :  { %3291 = vst [vmem:[#allocation21_spill] sm:$0xff] %v2752_v63 }
 0x225   :  { %657 = vmatmul.f32.vlgmr.msra.gmra.mxu0 %v640_v55  ;;  %677 = vmatmul.f32.vlgmr.msrb.gmra.mxu1 %v640_v55  ;;  %3292 = vst [vmem:[#allocation9_spill] sm:$0xff] %v2758_v61 }
 0x226   :  { %697 = vmatmul.f32.vlgmr.msra.gmra.mxu2 %v640_v55  ;;  %717 = vmatmul.f32.vlgmr.msra.gmra.mxu3 %v640_v55  ;;  %v2765_v55 = vld [vmem:[%s3062_s2 + $0x10] sm:$0xff] }
 0x227   :  { %837 = vmatpush.msra.mxu0 %v2398_v57  ;;  %857 = vmatpush.msrb.mxu1 %v2404_v47  ;;  %3293 = vst [vmem:[#allocation22_spill] sm:$0xff] %v2765_v55 }
 0x228   :  { %877 = vmatpush.msra.mxu2 %v2410_v17  ;;  %897 = vmatpush.msra.mxu3 %v2416_v59 }
 0x229   :  { %838 = vmatpush.msra.mxu0 %v2422_v8  ;;  %858 = vmatpush.msrb.mxu1 %v2428_v3 }
 0x22a   :  { %878 = vmatpush.msra.mxu2 %v2434_v51  ;;  %898 = vmatpush.msra.mxu3 %v2440_v4 }
 0x22b   :  { %839 = vmatpush.msra.mxu0 %v2446_v18  ;;  %859 = vmatpush.msrb.mxu1 %v2452_v0 }
 0x22c   :  { %879 = vmatpush.msra.mxu2 %v2458_v53  ;;  %899 = vmatpush.msra.mxu3 %v2464_v1 }
 0x22d   :  { %840 = vmatpush.msra.mxu0 %v2470_v54  ;;  %860 = vmatpush.msrb.mxu1 %v2476_v2 }
 0x22e   :  { %880 = vmatpush.msra.mxu2 %v2482_v6  ;;  %900 = vmatpush.msra.mxu3 %v2488_v7 }
 0x22f   :  { %841 = vmatpush.msra.mxu0 %v2494_v9  ;;  %861 = vmatpush.msrb.mxu1 %v2500_v11 }
 0x230   :  { %881 = vmatpush.msra.mxu2 %v2506_v12  ;;  %901 = vmatpush.msra.mxu3 %v2512_v13 }
 0x231   :  { %842 = vmatpush.msra.mxu0 %v2518_v14  ;;  %862 = vmatpush.msrb.mxu1 %v2524_v15 }
 0x232   :  { %882 = vmatpush.msra.mxu2 %v2530_v16  ;;  %902 = vmatpush.msra.mxu3 %v2536_v19 }
 0x233   :  { %843 = vmatpush.msra.mxu0 %v2542_v20  ;;  %863 = vmatpush.msrb.mxu1 %v2548_v21 }
 0x234   :  { %883 = vmatpush.msra.mxu2 %v2554_v22  ;;  %903 = vmatpush.msra.mxu3 %v2560_v23 }
 0x235   :  { %844 = vmatpush.msra.mxu0 %v2566_v24  ;;  %864 = vmatpush.msrb.mxu1 %v2572_v25 }
 0x236   :  { %884 = vmatpush.msra.mxu2 %v2578_v26  ;;  %904 = vmatpush.msra.mxu3 %v2584_v28 }
 0x237   :  { %845 = vmatpush.msra.mxu0 %v2590_v29  ;;  %865 = vmatpush.msrb.mxu1 %v2596_v30 }
 0x238   :  { %885 = vmatpush.msra.mxu2 %v2602_v32  ;;  %905 = vmatpush.msra.mxu3 %v2608_v33 }
 0x239   :  { %846 = vmatpush.msra.mxu0 %v2614_v34  ;;  %866 = vmatpush.msrb.mxu1 %v2620_v35 }
 0x23a   :  { %886 = vmatpush.msra.mxu2 %v2626_v36  ;;  %906 = vmatpush.msra.mxu3 %v2632_v37 }
 0x23b   :  { %847 = vmatpush.msra.mxu0 %v2638_v38  ;;  %867 = vmatpush.msrb.mxu1 %v2644_v39 }
 0x23c   :  { %887 = vmatpush.msra.mxu2 %v2650_v40  ;;  %907 = vmatpush.msra.mxu3 %v2656_v41 }
 0x23d   :  { %848 = vmatpush.msra.mxu0 %v2662_v43  ;;  %868 = vmatpush.msrb.mxu1 %v2668_v46 }
 0x23e   :  { %888 = vmatpush.msra.mxu2 %v2674_v48  ;;  %908 = vmatpush.msra.mxu3 %v2680_v49 }
 0x23f   :  { %849 = vmatpush.msra.mxu0 %v2686_v50  ;;  %869 = vmatpush.msrb.mxu1 %v2692_v52  ;;  %v3298_v52 = vld [vmem:[#allocation39_spill] sm:$0xff] }
 0x240   :  { %889 = vmatpush.msra.mxu2 %v2698_v56  ;;  %909 = vmatpush.msra.mxu3 %v2704_v31 }
 0x241   :  { %850 = vmatpush.msra.mxu0 %v2710_v5  ;;  %870 = vmatpush.msrb.mxu1 %v2716_v62 }
 0x242   :  { %890 = vmatpush.msra.mxu2 %v2722_v44  ;;  %910 = vmatpush.msra.mxu3 %v2728_v42  ;;  %v3296_v42 = vld [vmem:[#allocation45_spill] sm:$0xff] }
 0x243   :  { %851 = vmatpush.msra.mxu0 %v2734_v58  ;;  %871 = vmatpush.msrb.mxu1 %v2740_v45  ;;  %v3295_v58 = vld [vmem:[#allocation36_spill] sm:$0xff] }
 0x244   :  { %891 = vmatpush.msra.mxu2 %v2746_v60  ;;  %911 = vmatpush.msra.mxu3 %v2752_v63  ;;  %v2771_v63 = vld [vmem:[%s3062_s2 + $0x18] sm:$0xff] }
 0x245   :  { %852 = vmatpush.msra.mxu0 %v2758_v61  ;;  %872 = vmatpush.msrb.mxu1 %v3269_v27  ;;  %3294 = vst [vmem:[#allocation20_spill] sm:$0xff] %v2771_v63 }
 0x246   :  { %892 = vmatpush.msra.mxu2 %v2765_v55  ;;  %912 = vmatpush.msra.mxu3 %v2771_v63  ;;  %v3297_v55 = vld [vmem:[#allocation38_spill] sm:$0xff] }
 0x2a2   :  { %v658_v60 = vpop.f32.mrf.mxu0  ;;  %v678_v45 = vpop.f32.mrf.mxu1 }
 0x2a3   :  { %v659_v61 = vadd.f32 %v658_v60, %v3295_v58  ;;  %v679_v27 = vadd.f32 %v678_v45, %v3296_v42 }
 0x2a5   :  { %v721_v44 = vmul.f32 0.5, %v659_v61  ;;  %v725_v62 = vmul.f32 0.5, %v679_v27  ;;  %v3307_v27 = vld [vmem:[#allocation7_spill] sm:$0xff] }
 0x2a7   :  { %1369 = vtanh.f32 %v721_v44 }
 0x2a8   :  { %1371 = vtanh.f32 %v725_v62 }
 0x2a9   :  { %v698_v5 = vpop.f32.mrf.mxu2  ;;  %v718_v31 = vpop.f32.mrf.mxu3 }
 0x2aa   :  { %v699_v56 = vadd.f32 %v698_v5, %v3297_v55  ;;  %v719_v50 = vadd.f32 %v718_v31, %v3298_v52  ;;  %v3304_v31 = vld [vmem:[#allocation37_spill] sm:$0xff]  ;;  %v3306_v55 = vld [vmem:[#allocation32_spill] sm:$0xff] }
 0x2ac   :  { %1373 = vtanh.f32 %v699_v56  ;;  %v730_v49 = vmul.f32 0.5, %v719_v50 }
 0x2ad   :  { %v1370_v48 = vpop.eup %1369 }
 0x2ae   :  { %v1372_v63 = vpop.eup %1371  ;;  %v723_v46 = vmul.f32 0.5, %v1370_v48  ;;  %1375 = vtanh.f32 %v730_v49  ;;  %v3302_v48 = vld [vmem:[#allocation15_spill] sm:$0xff]  ;;  %v3303_v49 = vld [vmem:[#allocation5_spill] sm:$0xff] }
 0x2af   :  { %v727_v43 = vmul.f32 0.5, %v1372_v63  ;;  %v3305_v63 = vld [vmem:[#allocation31_spill] sm:$0xff] }
 0x2b0   :  { %v724_v58 = vadd.f32 0.5, %v723_v46  ;;  %v3301_v46 = vld [vmem:[#allocation10_spill] sm:$0xff] }
 0x2b1   :  { %v728_v60 = vadd.f32 0.5, %v727_v43  ;;  %v3300_v43 = vld [vmem:[#allocation11_spill] sm:$0xff] }
 0x2b2   :  { %v1374_v42 = vpop.eup %1373 }
 0x2b3   :  { %v734_v45 = vmul.f32 %v728_v60, %v2392_v10  ;;  %v735_v44 = vmul.f32 %v1374_v42, %v724_v58  ;;  %v3299_v10 = vld [vmem:[#allocation6_spill] sm:$0xff]  ;;  %v3308_v58 = vld [vmem:[#allocation16_spill] sm:$0xff] }
 0x2b4   :  { %v1376_v62 = vpop.eup %1375  ;;  %v3309_v60 = vld [vmem:[#allocation14_spill] sm:$0xff] }
 0x2b5   :  { %v2779_v61 = vadd.f32 %v735_v44, %v734_v45  ;;  %v732_v5 = vmul.f32 0.5, %v1376_v62  ;;  %v3310_v42 = vld [vmem:[#allocation18_spill] sm:$0xff]  ;;  %v3311_v45 = vld [vmem:[#allocation8_spill] sm:$0xff]  ;;  %v3312_v44 = vld [vmem:[#allocation19_spill] sm:$0xff] }
 0x2b6   :  { %v3313_v62 = vld [vmem:[#allocation17_spill] sm:$0xff] }
 0x2b7   :  { %1377 = vtanh.f32 %v2779_v61  ;;  %v733_v52 = vadd.f32 0.5, %v732_v5  ;;  %v3314_v5 = vld [vmem:[#allocation21_spill] sm:$0xff] }
 0x2bd   :  { %v1378_v56 = vpop.eup %1377 }
 0x2be   :  { %v738_v50 = vmul.f32 %v1378_v56, %v733_v52  ;;  %v3315_v52 = vld [vmem:[#allocation9_spill] sm:$0xff] }
 0x2bf   :  { %v2846_v56 = vld [vmem:[%s3062_s2 + $0x8] sm:$0xff] }
 0x2c0   :  { %755 = vmatmul.f32.vlgmr.msrb.gmra.mxu0 %v738_v50  ;;  %775 = vmatmul.f32.vlgmr.msra.gmra.mxu1 %v738_v50  ;;  %3316 = vst [vmem:[#allocation23_spill] sm:$0xff] %v2846_v56 }
 0x2c1   :  { %795 = vmatmul.f32.vlgmr.msrb.gmra.mxu2 %v738_v50  ;;  %815 = vmatmul.f32.vlgmr.msrb.gmra.mxu3 %v738_v50  ;;  %v3317_v50 = vld [vmem:[#allocation22_spill] sm:$0xff] }
 0x2c2   :  { %935 = vmatpush.msrb.mxu0 %v2398_v57  ;;  %955 = vmatpush.msra.mxu1 %v2404_v47 }
 0x2c3   :  { %975 = vmatpush.msrb.mxu2 %v2410_v17  ;;  %995 = vmatpush.msrb.mxu3 %v2416_v59 }
 0x2c4   :  { %936 = vmatpush.msrb.mxu0 %v2422_v8  ;;  %956 = vmatpush.msra.mxu1 %v2428_v3 }
 0x2c5   :  { %976 = vmatpush.msrb.mxu2 %v2434_v51  ;;  %996 = vmatpush.msrb.mxu3 %v2440_v4 }
 0x2c6   :  { %937 = vmatpush.msrb.mxu0 %v2446_v18  ;;  %957 = vmatpush.msra.mxu1 %v2452_v0 }
 0x2c7   :  { %977 = vmatpush.msrb.mxu2 %v2458_v53  ;;  %997 = vmatpush.msrb.mxu3 %v2464_v1 }
 0x2c8   :  { %938 = vmatpush.msrb.mxu0 %v2470_v54  ;;  %958 = vmatpush.msra.mxu1 %v2476_v2 }
 0x2c9   :  { %978 = vmatpush.msrb.mxu2 %v2482_v6  ;;  %998 = vmatpush.msrb.mxu3 %v2488_v7 }
 0x2ca   :  { %939 = vmatpush.msrb.mxu0 %v2494_v9  ;;  %959 = vmatpush.msra.mxu1 %v2500_v11 }
 0x2cb   :  { %979 = vmatpush.msrb.mxu2 %v2506_v12  ;;  %999 = vmatpush.msrb.mxu3 %v2512_v13 }
 0x2cc   :  { %940 = vmatpush.msrb.mxu0 %v2518_v14  ;;  %960 = vmatpush.msra.mxu1 %v2524_v15 }
 0x2cd   :  { %980 = vmatpush.msrb.mxu2 %v2530_v16  ;;  %1000 = vmatpush.msrb.mxu3 %v2536_v19 }
 0x2ce   :  { %941 = vmatpush.msrb.mxu0 %v2542_v20  ;;  %961 = vmatpush.msra.mxu1 %v2548_v21 }
 0x2cf   :  { %981 = vmatpush.msrb.mxu2 %v2554_v22  ;;  %1001 = vmatpush.msrb.mxu3 %v2560_v23 }
 0x2d0   :  { %942 = vmatpush.msrb.mxu0 %v2566_v24  ;;  %962 = vmatpush.msra.mxu1 %v2572_v25 }
 0x2d1   :  { %982 = vmatpush.msrb.mxu2 %v2578_v26  ;;  %1002 = vmatpush.msrb.mxu3 %v2584_v28 }
 0x2d2   :  { %943 = vmatpush.msrb.mxu0 %v2590_v29  ;;  %963 = vmatpush.msra.mxu1 %v2596_v30 }
 0x2d3   :  { %983 = vmatpush.msrb.mxu2 %v2602_v32  ;;  %1003 = vmatpush.msrb.mxu3 %v2608_v33 }
 0x2d4   :  { %944 = vmatpush.msrb.mxu0 %v2614_v34  ;;  %964 = vmatpush.msra.mxu1 %v2620_v35 }
 0x2d5   :  { %984 = vmatpush.msrb.mxu2 %v2626_v36  ;;  %1004 = vmatpush.msrb.mxu3 %v2632_v37 }
 0x2d6   :  { %945 = vmatpush.msrb.mxu0 %v2638_v38  ;;  %965 = vmatpush.msra.mxu1 %v2644_v39 }
 0x2d7   :  { %985 = vmatpush.msrb.mxu2 %v2650_v40  ;;  %1005 = vmatpush.msrb.mxu3 %v2656_v41 }
 0x2d8   :  { %946 = vmatpush.msrb.mxu0 %v3299_v10  ;;  %966 = vmatpush.msra.mxu1 %v3300_v43 }
 0x2d9   :  { %986 = vmatpush.msrb.mxu2 %v3301_v46  ;;  %1006 = vmatpush.msrb.mxu3 %v3302_v48  ;;  %v3322_v48 = vld [vmem:[#allocation43_spill] sm:$0xff] }
 0x2da   :  { %947 = vmatpush.msrb.mxu0 %v3303_v49  ;;  %967 = vmatpush.msra.mxu1 %v3304_v31  ;;  %v3321_v31 = vld [vmem:[#allocation42_spill] sm:$0xff] }
 0x2db   :  { %987 = vmatpush.msrb.mxu2 %v3305_v63  ;;  %1007 = vmatpush.msrb.mxu3 %v3306_v55 }
 0x2dc   :  { %948 = vmatpush.msrb.mxu0 %v3307_v27  ;;  %968 = vmatpush.msra.mxu1 %v3308_v58 }
 0x2dd   :  { %988 = vmatpush.msrb.mxu2 %v3309_v60  ;;  %1008 = vmatpush.msrb.mxu3 %v3310_v42  ;;  %v3318_v42 = vld [vmem:[#allocation20_spill] sm:$0xff] }
 0x2de   :  { %949 = vmatpush.msrb.mxu0 %v3311_v45  ;;  %969 = vmatpush.msra.mxu1 %v3312_v44  ;;  %v3319_v44 = vld [vmem:[#allocation40_spill] sm:$0xff] }
 0x2df   :  { %989 = vmatpush.msrb.mxu2 %v3313_v62  ;;  %1009 = vmatpush.msrb.mxu3 %v3314_v5  ;;  %v3320_v62 = vld [vmem:[#allocation48_spill] sm:$0xff] }
 0x2e0   :  { %950 = vmatpush.msrb.mxu0 %v3315_v52  ;;  %970 = vmatpush.msra.mxu1 %v2846_v56 }
 0x2e1   :  { %990 = vmatpush.msrb.mxu2 %v3317_v50  ;;  %1010 = vmatpush.msrb.mxu3 %v3318_v42 }
 0x33d   :  { %v756_v45 = vpop.f32.mrf.mxu0  ;;  %v776_v60 = vpop.f32.mrf.mxu1 }
 0x33e   :  { %v757_v58 = vadd.f32 %v756_v45, %v3319_v44  ;;  %v777_v27 = vadd.f32 %v776_v60, %v3320_v62 }
 0x340   :  { %v819_v5 = vmul.f32 0.5, %v757_v58  ;;  %v823_v55 = vmul.f32 0.5, %v777_v27 }
 0x342   :  { %1379 = vtanh.f32 %v819_v5 }
 0x343   :  { %1381 = vtanh.f32 %v823_v55 }
 0x344   :  { %v796_v52 = vpop.f32.mrf.mxu2  ;;  %v816_v63 = vpop.f32.mrf.mxu3 }
 0x345   :  { %v797_v49 = vadd.f32 %v796_v52, %v3321_v31  ;;  %v817_v56 = vadd.f32 %v816_v63, %v3322_v48  ;;  %v1136_v52 = vld [vmem:[%s3064_s4] sm:$0xff] }
 0x347   :  { %1383 = vtanh.f32 %v797_v49  ;;  %v828_v50 = vmul.f32 0.5, %v817_v56  ;;  %v1138_v56 = vld [vmem:[%s3064_s4 + $0x18] sm:$0xff] }
 0x348   :  { %v1380_v46 = vpop.eup %1379 }
 0x349   :  { %v1382_v42 = vpop.eup %1381  ;;  %v821_v43 = vmul.f32 0.5, %v1380_v46  ;;  %1385 = vtanh.f32 %v828_v50  ;;  %v1137_v50 = vld [vmem:[%s3064_s4 + $0x10] sm:$0xff] }
 0x34a   :  { %v825_v10 = vmul.f32 0.5, %v1382_v42 }
 0x34b   :  { %v822_v45 = vadd.f32 0.5, %v821_v43 }
 0x34c   :  { %v826_v44 = vadd.f32 0.5, %v825_v10 }
 0x34d   :  { %v1384_v60 = vpop.eup %1383 }
 0x34e   :  { %v832_v27 = vmul.f32 %v826_v44, %v2779_v61  ;;  %v833_v58 = vmul.f32 %v1384_v60, %v822_v45  ;;  %v3347_v60 = vld [vmem:[#allocation4_spill] sm:$0xff] }
 0x34f   :  { %v1386_v55 = vpop.eup %1385 }
 0x350   :  { %v2856_v62 = vadd.f32 %v833_v58, %v832_v27  ;;  %v830_v31 = vmul.f32 0.5, %v1386_v55  ;;  %v3348_v58 = vld [vmem:[#allocation54_spill] sm:$0xff] }
 0x352   :  { %1387 = vtanh.f32 %v2856_v62  ;;  %v831_v48 = vadd.f32 0.5, %v830_v31 }
 0x358   :  { %v1388_v49 = vpop.eup %1387 }
 0x359   :  { %v836_v63 = vmul.f32 %v1388_v49, %v831_v48 }
 0x35b   :  { %853 = vmatmul.f32.vlgmr.msra.gmra.mxu0 %v836_v63  ;;  %873 = vmatmul.f32.vlgmr.msrb.gmra.mxu1 %v836_v63 }
 0x35c   :  { %893 = vmatmul.f32.vlgmr.msra.gmra.mxu2 %v836_v63  ;;  %913 = vmatmul.f32.vlgmr.msra.gmra.mxu3 %v836_v63  ;;  %v3349_v63 = vld [vmem:[#allocation49_spill] sm:$0xff] }
 0x35d   :  { %1033 = vmatpush.msra.mxu0 %v2398_v57  ;;  %1053 = vmatpush.msrb.mxu1 %v2404_v47  ;;  %v3323_v57 = vld [vmem:[#allocation6_spill] sm:$0xff]  ;;  %v3324_v47 = vld [vmem:[#allocation11_spill] sm:$0xff] }
 0x35e   :  { %1073 = vmatpush.msra.mxu2 %v2410_v17  ;;  %1093 = vmatpush.msra.mxu3 %v2416_v59  ;;  %v3325_v17 = vld [vmem:[#allocation10_spill] sm:$0xff]  ;;  %v3326_v59 = vld [vmem:[#allocation15_spill] sm:$0xff] }
 0x35f   :  { %1034 = vmatpush.msra.mxu0 %v2422_v8  ;;  %1054 = vmatpush.msrb.mxu1 %v2428_v3  ;;  %v3327_v8 = vld [vmem:[#allocation5_spill] sm:$0xff] }
 0x360   :  { %1074 = vmatpush.msra.mxu2 %v2434_v51  ;;  %1094 = vmatpush.msra.mxu3 %v2440_v4  ;;  %v3328_v3 = vld [vmem:[#allocation37_spill] sm:$0xff]  ;;  %v3329_v51 = vld [vmem:[#allocation31_spill] sm:$0xff]  ;;  %v3330_v4 = vld [vmem:[#allocation32_spill] sm:$0xff] }
 0x361   :  { %1035 = vmatpush.msra.mxu0 %v2446_v18  ;;  %1055 = vmatpush.msrb.mxu1 %v2452_v0  ;;  %v3331_v18 = vld [vmem:[#allocation7_spill] sm:$0xff]  ;;  %v3332_v0 = vld [vmem:[#allocation16_spill] sm:$0xff] }
 0x362   :  { %1075 = vmatpush.msra.mxu2 %v2458_v53  ;;  %1095 = vmatpush.msra.mxu3 %v2464_v1  ;;  %v3333_v53 = vld [vmem:[#allocation14_spill] sm:$0xff] }
 0x363   :  { %1036 = vmatpush.msra.mxu0 %v2470_v54  ;;  %1056 = vmatpush.msrb.mxu1 %v2476_v2  ;;  %v3334_v1 = vld [vmem:[#allocation18_spill] sm:$0xff]  ;;  %v3335_v54 = vld [vmem:[#allocation8_spill] sm:$0xff]  ;;  %v3336_v2 = vld [vmem:[#allocation19_spill] sm:$0xff] }
 0x364   :  { %1076 = vmatpush.msra.mxu2 %v2482_v6  ;;  %1096 = vmatpush.msra.mxu3 %v2488_v7  ;;  %v3337_v6 = vld [vmem:[#allocation17_spill] sm:$0xff] }
 0x365   :  { %1037 = vmatpush.msra.mxu0 %v2494_v9  ;;  %1057 = vmatpush.msrb.mxu1 %v2500_v11  ;;  %v3338_v7 = vld [vmem:[#allocation21_spill] sm:$0xff]  ;;  %v3340_v11 = vld [vmem:[#allocation23_spill] sm:$0xff] }
 0x366   :  { %1077 = vmatpush.msra.mxu2 %v2506_v12  ;;  %1097 = vmatpush.msra.mxu3 %v2512_v13  ;;  %v3339_v9 = vld [vmem:[#allocation9_spill] sm:$0xff]  ;;  %v3341_v12 = vld [vmem:[#allocation22_spill] sm:$0xff]  ;;  %v3342_v13 = vld [vmem:[#allocation20_spill] sm:$0xff] }
 0x367   :  { %1038 = vmatpush.msra.mxu0 %v2518_v14  ;;  %1058 = vmatpush.msrb.mxu1 %v2524_v15 }
 0x368   :  { %1078 = vmatpush.msra.mxu2 %v2530_v16  ;;  %1098 = vmatpush.msra.mxu3 %v2536_v19  ;;  %v3343_v16 = vld [vmem:[#allocation44_spill] sm:$0xff] }
 0x369   :  { %1039 = vmatpush.msra.mxu0 %v2542_v20  ;;  %1059 = vmatpush.msrb.mxu1 %v2548_v21  ;;  %v3344_v20 = vld [vmem:[#allocation51_spill] sm:$0xff] }
 0x36a   :  { %1079 = vmatpush.msra.mxu2 %v2554_v22  ;;  %1099 = vmatpush.msra.mxu3 %v2560_v23 }
 0x36b   :  { %1040 = vmatpush.msra.mxu0 %v2566_v24  ;;  %1060 = vmatpush.msrb.mxu1 %v2572_v25 }
 0x36c   :  { %1080 = vmatpush.msra.mxu2 %v2578_v26  ;;  %1100 = vmatpush.msra.mxu3 %v2584_v28  ;;  %v3345_v26 = vld [vmem:[#allocation46_spill] sm:$0xff] }
 0x36d   :  { %1041 = vmatpush.msra.mxu0 %v2590_v29  ;;  %1061 = vmatpush.msrb.mxu1 %v2596_v30  ;;  %v3346_v29 = vld [vmem:[#allocation47_spill] sm:$0xff] }
 0x36e   :  { %1081 = vmatpush.msra.mxu2 %v2602_v32  ;;  %1101 = vmatpush.msra.mxu3 %v2608_v33 }
 0x36f   :  { %1042 = vmatpush.msra.mxu0 %v2614_v34  ;;  %1062 = vmatpush.msrb.mxu1 %v2620_v35 }
 0x370   :  { %1082 = vmatpush.msra.mxu2 %v2626_v36  ;;  %1102 = vmatpush.msra.mxu3 %v2632_v37 }
 0x371   :  { %1043 = vmatpush.msra.mxu0 %v2638_v38  ;;  %1063 = vmatpush.msrb.mxu1 %v2644_v39 }
 0x372   :  { %1083 = vmatpush.msra.mxu2 %v2650_v40  ;;  %1103 = vmatpush.msra.mxu3 %v2656_v41 }
 0x373   :  { %1044 = vmatpush.msra.mxu0 %v3323_v57  ;;  %1064 = vmatpush.msrb.mxu1 %v3324_v47  ;;  %v3350_v47 = vld [vmem:[#allocation50_spill] sm:$0xff] }
 0x374   :  { %1084 = vmatpush.msra.mxu2 %v3325_v17  ;;  %1104 = vmatpush.msra.mxu3 %v3326_v59 }
 0x375   :  { %1045 = vmatpush.msra.mxu0 %v3327_v8  ;;  %1065 = vmatpush.msrb.mxu1 %v3328_v3 }
 0x376   :  { %1085 = vmatpush.msra.mxu2 %v3329_v51  ;;  %1105 = vmatpush.msra.mxu3 %v3330_v4 }
 0x377   :  { %1046 = vmatpush.msra.mxu0 %v3331_v18  ;;  %1066 = vmatpush.msrb.mxu1 %v3332_v0 }
 0x378   :  { %1086 = vmatpush.msra.mxu2 %v3333_v53  ;;  %1106 = vmatpush.msra.mxu3 %v3334_v1 }
 0x379   :  { %1047 = vmatpush.msra.mxu0 %v3335_v54  ;;  %1067 = vmatpush.msrb.mxu1 %v3336_v2 }
 0x37a   :  { %1087 = vmatpush.msra.mxu2 %v3337_v6  ;;  %1107 = vmatpush.msra.mxu3 %v3338_v7 }
 0x37b   :  { %1048 = vmatpush.msra.mxu0 %v3339_v9  ;;  %1068 = vmatpush.msrb.mxu1 %v3340_v11 }
 0x37c   :  { %1088 = vmatpush.msra.mxu2 %v3341_v12  ;;  %1108 = vmatpush.msra.mxu3 %v3342_v13  ;;  %v1234_v13 = vld [vmem:[%s3065_s6 + $0x78] sm:$0xff] }
 0x3d8   :  { %v854_v14 = vpop.f32.mrf.mxu0  ;;  %v874_v15 = vpop.f32.mrf.mxu1 }
 0x3d9   :  { %v855_v19 = vadd.f32 %v854_v14, %v3343_v16  ;;  %v875_v21 = vadd.f32 %v874_v15, %v3344_v20  ;;  %v1491_v14 = vld [vmem:[%s3061_s0 + $0x38] sm:$0xff]  ;;  %v1233_v15 = vld [vmem:[%s3065_s6 + $0x70] sm:$0xff]  ;;  %v1232_v16 = vld [vmem:[%s3065_s6 + $0x68] sm:$0xff] }
 0x3da   :  { %v1231_v20 = vld [vmem:[%s3065_s6 + $0x60] sm:$0xff] }
 0x3db   :  { %v917_v22 = vmul.f32 0.5, %v855_v19  ;;  %v921_v23 = vmul.f32 0.5, %v875_v21  ;;  %v1250_v19 = vld [vmem:[%s3066_s7 + $0x78] sm:$0xff]  ;;  %v1249_v21 = vld [vmem:[%s3066_s7 + $0x70] sm:$0xff] }
 0x3dd   :  { %1389 = vtanh.f32 %v917_v22  ;;  %v1230_v22 = vld [vmem:[%s3065_s6 + $0x58] sm:$0xff] }
 0x3de   :  { %1391 = vtanh.f32 %v921_v23  ;;  %v1248_v23 = vld [vmem:[%s3066_s7 + $0x68] sm:$0xff] }
 0x3df   :  { %v894_v24 = vpop.f32.mrf.mxu2  ;;  %v914_v25 = vpop.f32.mrf.mxu3 }
 0x3e0   :  { %v895_v28 = vadd.f32 %v894_v24, %v3345_v26  ;;  %v915_v30 = vadd.f32 %v914_v25, %v3346_v29  ;;  %v1229_v24 = vld [vmem:[%s3065_s6 + $0x50] sm:$0xff]  ;;  %v1247_v25 = vld [vmem:[%s3066_s7 + $0x60] sm:$0xff]  ;;  %v1228_v26 = vld [vmem:[%s3065_s6 + $0x48] sm:$0xff] }
 0x3e1   :  { %v1227_v29 = vld [vmem:[%s3065_s6 + $0x40] sm:$0xff] }
 0x3e2   :  { %1393 = vtanh.f32 %v895_v28  ;;  %v926_v32 = vmul.f32 0.5, %v915_v30  ;;  %v1246_v28 = vld [vmem:[%s3066_s7 + $0x58] sm:$0xff]  ;;  %v1245_v30 = vld [vmem:[%s3066_s7 + $0x50] sm:$0xff] }
 0x3e3   :  { %v1390_v33 = vpop.eup %1389 }
 0x3e4   :  { %v1392_v34 = vpop.eup %1391  ;;  %v919_v35 = vmul.f32 0.5, %v1390_v33  ;;  %1395 = vtanh.f32 %v926_v32  ;;  %v1226_v32 = vld [vmem:[%s3065_s6 + $0x38] sm:$0xff]  ;;  %v1244_v33 = vld [vmem:[%s3066_s7 + $0x48] sm:$0xff] }
 0x3e5   :  { %v923_v36 = vmul.f32 0.5, %v1392_v34  ;;  %v1225_v34 = vld [vmem:[%s3065_s6 + $0x30] sm:$0xff] }
 0x3e6   :  { %v920_v37 = vadd.f32 0.5, %v919_v35  ;;  %v1243_v35 = vld [vmem:[%s3066_s7 + $0x40] sm:$0xff] }
 0x3e7   :  { %v924_v38 = vadd.f32 0.5, %v923_v36  ;;  %v1224_v36 = vld [vmem:[%s3065_s6 + $0x28] sm:$0xff] }
 0x3e8   :  { %v1394_v39 = vpop.eup %1393 }
 0x3e9   :  { %v930_v40 = vmul.f32 %v924_v38, %v2856_v62  ;;  %v931_v41 = vmul.f32 %v1394_v39, %v920_v37  ;;  %v1242_v37 = vld [vmem:[%s3066_s7 + $0x38] sm:$0xff]  ;;  %v1223_v38 = vld [vmem:[%s3065_s6 + $0x20] sm:$0xff]  ;;  %v1241_v39 = vld [vmem:[%s3066_s7 + $0x30] sm:$0xff] }
 0x3ea   :  { %v1396_v61 = vpop.eup %1395 }
 0x3eb   :  { %v932_v10 = vadd.f32 %v931_v41, %v930_v40  ;;  %v928_v43 = vmul.f32 0.5, %v1396_v61  ;;  %v1222_v40 = vld [vmem:[%s3065_s6 + $0x18] sm:$0xff]  ;;  %v1240_v41 = vld [vmem:[%s3066_s7 + $0x28] sm:$0xff]  ;;  %v1221_v61 = vld [vmem:[%s3065_s6 + $0x10] sm:$0xff] }
 0x3ed   :  { %1397 = vtanh.f32 %v932_v10  ;;  %v929_v46 = vadd.f32 0.5, %v928_v43  ;;  %v1220_v43 = vld [vmem:[%s3065_s6 + $0x8] sm:$0xff] }
 0x3f3   :  { %v1398_v42 = vpop.eup %1397 }
 0x3f4   :  { %v934_v5 = vmul.f32 %v1398_v42, %v929_v46  ;;  %v1238_v46 = vld [vmem:[%s3066_s7 + $0x18] sm:$0xff]  ;;  %v1219_v42 = vld [vmem:[%s3065_s6] sm:$0xff] }
 0x3f6   :  { %951 = vmatmul.f32.vlgmr.msrb.gmra.mxu0 %v934_v5  ;;  %971 = vmatmul.f32.vlgmr.msra.gmra.mxu1 %v934_v5 }
 0x3f7   :  { %991 = vmatmul.f32.vlgmr.msrb.gmra.mxu2 %v934_v5  ;;  %1011 = vmatmul.f32.vlgmr.msrb.gmra.mxu3 %v934_v5  ;;  %v1237_v5 = vld [vmem:[%s3066_s7 + $0x10] sm:$0xff] }
 0x3f8   :  { %1162 = vmatpush.msrb.mxu0 %v1136_v52  ;;  %1202 = vmatpush.msrb.mxu2 %v1138_v56 }
 0x3f9   :  { %1182 = vmatpush.msra.mxu1 %v1137_v50  ;;  %1251 = vmatpush.msrb.mxu3 %v1250_v19  ;;  %v1236_v50 = vld [vmem:[%s3066_s7 + $0x8] sm:$0xff] }
 0x3fb   :  { %1252 = vmatpush.msrb.mxu3 %v1249_v21 }
 0x3fd   :  { %1253 = vmatpush.msrb.mxu3 %v1248_v23 }
 0x3ff   :  { %1254 = vmatpush.msrb.mxu3 %v1247_v25 }
 0x401   :  { %1255 = vmatpush.msrb.mxu3 %v1246_v28 }
 0x403   :  { %1256 = vmatpush.msrb.mxu3 %v1245_v30 }
 0x405   :  { %1257 = vmatpush.msrb.mxu3 %v1244_v33 }
 0x407   :  { %1258 = vmatpush.msrb.mxu3 %v1243_v35 }
 0x409   :  { %1259 = vmatpush.msrb.mxu3 %v1242_v37 }
 0x40b   :  { %1260 = vmatpush.msrb.mxu3 %v1241_v39 }
 0x40d   :  { %1261 = vmatpush.msrb.mxu3 %v1240_v41 }
 0x473   :  { %v952_v45 = vpop.f32.mrf.mxu0  ;;  %v972_v44 = vpop.f32.mrf.mxu1 }
 0x474   :  { %v953_v27 = vadd.f32 %v952_v45, %v3347_v60  ;;  %v973_v55 = vadd.f32 %v972_v44, %v3348_v58  ;;  %v3351_v45 = vld [vmem:[#allocation30_spill] sm:$0xff]  ;;  %v3352_v60 = vld [vmem:[#allocation55_spill] sm:$0xff]  ;;  %v1235_v58 = vld [vmem:[%s3066_s7] sm:$0xff] }
 0x476   :  { %v1015_v62 = vmul.f32 0.5, %v953_v27  ;;  %v1019_v31 = vmul.f32 0.5, %v973_v55  ;;  %v1139_v55 = vld [vmem:[%s3067_s5] sm:$0xf] }
 0x478   :  { %1399 = vtanh.f32 %v1015_v62 }
 0x479   :  { %1401 = vtanh.f32 %v1019_v31 }
 0x47a   :  { %v992_v48 = vpop.f32.mrf.mxu2  ;;  %v1012_v49 = vpop.f32.mrf.mxu3 }
 0x47b   :  { %v993_v57 = vadd.f32 %v992_v48, %v3349_v63  ;;  %v1013_v17 = vadd.f32 %v1012_v49, %v3350_v47  ;;  %v1141_v48 = vperm.slane %v1139_v55, 0  ;;  %v3353_v47 = vld [vmem:[#allocation52_spill] sm:$0xff] }
 0x47d   :  { %1403 = vtanh.f32 %v993_v57  ;;  %v1024_v59 = vmul.f32 0.5, %v1013_v17  ;;  %v1142_v57 = vperm.slane %v1139_v55, 2 }
 0x47e   :  { %v1400_v8 = vpop.eup %1399 }
 0x47f   :  { %v1402_v3 = vpop.eup %1401  ;;  %v1017_v51 = vmul.f32 0.5, %v1400_v8  ;;  %1405 = vtanh.f32 %v1024_v59  ;;  %v3354_v59 = vld [vmem:[#allocation53_spill] sm:$0xff] }
 0x480   :  { %v1021_v4 = vmul.f32 0.5, %v1402_v3 }
 0x481   :  { %v1018_v18 = vadd.f32 0.5, %v1017_v51 }
 0x482   :  { %v1022_v0 = vadd.f32 0.5, %v1021_v4 }
 0x483   :  { %v1404_v53 = vpop.eup %1403 }
 0x484   :  { %v1028_v1 = vmul.f32 %v1022_v0, %v932_v10  ;;  %v1029_v54 = vmul.f32 %v1404_v53, %v1018_v18  ;;  %v1239_v10 = vld [vmem:[%s3066_s7 + $0x20] sm:$0xff] }
 0x485   :  { %v1406_v2 = vpop.eup %1405  ;;  %1262 = vmatpush.msrb.mxu3 %v1239_v10 }
 0x486   :  { %v2941_v6 = vadd.f32 %v1029_v54, %v1028_v1  ;;  %v1026_v7 = vmul.f32 0.5, %v1406_v2 }
 0x487   :  { %1263 = vmatpush.msrb.mxu3 %v1238_v46 }
 0x488   :  { %1407 = vtanh.f32 %v2941_v6  ;;  %v1027_v9 = vadd.f32 0.5, %v1026_v7  ;;  %v1143_v7 = vperm.slane %v1139_v55, 3 }
 0x489   :  { %1264 = vmatpush.msrb.mxu3 %v1237_v5 }
 0x48b   :  { %1265 = vmatpush.msrb.mxu3 %v1236_v50 }
 0x48d   :  { %1266 = vmatpush.msrb.mxu3 %v1235_v58 }
 0x48e   :  { %v1408_v11 = vpop.eup %1407 }
 0x48f   :  { %v1032_v12 = vmul.f32 %v1408_v11, %v1027_v9 }
 0x491   :  { %1049 = vmatmul.f32.vlgmr.msra.gmra.mxu0 %v1032_v12  ;;  %1069 = vmatmul.f32.vlgmr.msrb.gmra.mxu1 %v1032_v12 }
 0x492   :  { %1089 = vmatmul.f32.vlgmr.msra.gmra.mxu2 %v1032_v12  ;;  %1109 = vmatmul.f32.vlgmr.msra.gmra.mxu3 %v1032_v12 }
 0x493   :  { %1271 = vmatpush.msra.mxu0 %v1234_v13 }
 0x495   :  { %1272 = vmatpush.msra.mxu0 %v1233_v15 }
 0x497   :  { %1273 = vmatpush.msra.mxu0 %v1232_v16 }
 0x499   :  { %1333 = vmatmul.msk.f32.vlgmr.msrb.gmra.mxu0 %vm50_vm0, %v1491_v14  ;;  %1334 = vmatmul.msk.f32.vlgmr.msra.gmra.mxu1 %vm50_vm0, %v1491_v14 }
 0x49a   :  { %1335 = vmatmul.msk.f32.vlgmr.msrb.gmra.mxu2 %vm50_vm0, %v1491_v14  ;;  %1274 = vmatpush.msra.mxu0 %v1231_v20 }
 0x49c   :  { %1275 = vmatpush.msra.mxu0 %v1230_v22 }
 0x49e   :  { %1276 = vmatpush.msra.mxu0 %v1229_v24 }
 0x4a0   :  { %1277 = vmatpush.msra.mxu0 %v1228_v26 }
 0x4a2   :  { %1278 = vmatpush.msra.mxu0 %v1227_v29 }
 0x4a4   :  { %1279 = vmatpush.msra.mxu0 %v1226_v32 }
 0x4a6   :  { %1280 = vmatpush.msra.mxu0 %v1225_v34 }
 0x4a8   :  { %1281 = vmatpush.msra.mxu0 %v1224_v36 }
 0x4aa   :  { %1282 = vmatpush.msra.mxu0 %v1223_v38  ;;  %v1338_v38 = vld [vmem:[%s3068_s8] ss:$0 sm:$0xff] }
 0x4ac   :  { %1283 = vmatpush.msra.mxu0 %v1222_v40 }
 0x4ae   :  { %1284 = vmatpush.msra.mxu0 %v1221_v61 }
 0x4b0   :  { %1285 = vmatpush.msra.mxu0 %v1220_v43 }
 0x4b2   :  { %1286 = vmatpush.msra.mxu0 %v1219_v42 }
 0x50e   :  { %v1050_v52 = vpop.f32.mrf.mxu0  ;;  %v1070_v56 = vpop.f32.mrf.mxu1 }
 0x50f   :  { %v1051_v44 = vadd.f32 %v1050_v52, %v3351_v45  ;;  %v1071_v27 = vadd.f32 %v1070_v56, %v3352_v60 }
 0x511   :  { %v1113_v62 = vmul.f32 0.5, %v1051_v44  ;;  %v1117_v31 = vmul.f32 0.5, %v1071_v27 }
 0x513   :  { %1409 = vtanh.f32 %v1113_v62 }
 0x514   :  { %1411 = vtanh.f32 %v1117_v31 }
 0x515   :  { %v1090_v49 = vpop.f32.mrf.mxu2  ;;  %v1110_v63 = vpop.f32.mrf.mxu3 }
 0x516   :  { %v1091_v17 = vadd.f32 %v1090_v49, %v3353_v47  ;;  %v1111_v8 = vadd.f32 %v1110_v63, %v3354_v59  ;;  %v1164_v3 = vpop.f32.mrf.mxu0  ;;  %v1184_v51 = vpop.f32.mrf.mxu1 }
 0x517   :  { %v1165_v4 = vadd.f32 %v1164_v3, %v1141_v48  ;;  %v1185_v1 = vadd.f32 %v1184_v51, %v1142_v57 }
 0x518   :  { %1413 = vtanh.f32 %v1091_v17  ;;  %v1122_v18 = vmul.f32 0.5, %v1111_v8 }
 0x519   :  { %v1410_v0 = vpop.eup %1409  ;;  %v1207_v53 = vmul.f32 0.5, %v1165_v4 }
 0x51a   :  { %v1412_v54 = vpop.eup %1411  ;;  %v1115_v2 = vmul.f32 0.5, %v1410_v0  ;;  %1415 = vtanh.f32 %v1122_v18 }
 0x51b   :  { %v1119_v9 = vmul.f32 0.5, %v1412_v54  ;;  %1417 = vtanh.f32 %v1207_v53 }
 0x51c   :  { %v1116_v11 = vadd.f32 0.5, %v1115_v2  ;;  %1419 = vtanh.f32 %v1185_v1 }
 0x51d   :  { %v1120_v12 = vadd.f32 0.5, %v1119_v9  ;;  %v1204_v13 = vpop.f32.mrf.mxu2 }
 0x51e   :  { %v1414_v14 = vpop.eup %1413  ;;  %v1205_v15 = vadd.f32 %v1204_v13, %v1143_v7 }
 0x51f   :  { %v1126_v16 = vmul.f32 %v1120_v12, %v2941_v6  ;;  %v1127_v19 = vmul.f32 %v1414_v14, %v1116_v11 }
 0x520   :  { %v1416_v20 = vpop.eup %1415  ;;  %v1212_v21 = vmul.f32 0.5, %v1205_v15 }
 0x521   :  { %v1418_v22 = vpop.eup %1417  ;;  %v1128_v23 = vadd.f32 %v1127_v19, %v1126_v16  ;;  %v1124_v26 = vmul.f32 0.5, %v1416_v20 }
 0x522   :  { %v1209_v24 = vmul.f32 0.5, %v1418_v22  ;;  %1421 = vtanh.f32 %v1212_v21  ;;  %v1420_v25 = vpop.eup %1419 }
 0x523   :  { %1423 = vtanh.f32 %v1128_v23  ;;  %v1125_v32 = vadd.f32 0.5, %v1124_v26 }
 0x524   :  { %v1210_v28 = vadd.f32 0.5, %v1209_v24 }
 0x526   :  { %v1216_v29 = vmul.f32 %v1420_v25, %v1210_v28 }
 0x528   :  { %v1422_v30 = vpop.eup %1421  ;;  %1425 = vtanh.f32 %v1216_v29 }
 0x529   :  { %v1424_v33 = vpop.eup %1423  ;;  %v1214_v34 = vmul.f32 0.5, %v1422_v30 }
 0x52a   :  { %v1130_v35 = vmul.f32 %v1424_v33, %v1125_v32 }
 0x52b   :  { %v1215_v36 = vadd.f32 0.5, %v1214_v34 }
 0x52c   :  { %1287 = vmatmul.f32.vlgmr.msra.gmra.mxu0 %v1130_v35 }
 0x52e   :  { %v1426_v6 = vpop.eup %1425 }
 0x52f   :  { %v1218_v37 = vmul.f32 %v1426_v6, %v1215_v36 }
 0x531   :  { %1267 = vmatmul.f32.vlgmr.msrb.gmra.mxu3 %v1218_v37 }
 0x5a9   :  { %v1288_v39 = vpop.f32.mrf.mxu0 }
 0x5b4   :  { %v1268_v40 = vpop.f32.mrf.mxu3 }
 0x5b5   :  { %v1289_v41 = vadd.f32 %v1288_v39, %v1268_v40 }
 0x5b7   :  { %v1295_v61 = vadd.f32 %v1338_v38, %v1289_v41 }
 0x5b9   :  { %1296 = vst [vmem:[%s3069_s9] sm:$0xff] %v1295_v61 }

</bundles_post_ra>
